<compile_context>
chip_gen: v5e
topology: v5e:2x2
jax: 0.10.0
libtpu: 0.0.40
codegen_flags: <defaults>
</compile_context>

<pallas_src>
import jax
import jax.numpy as jnp
from jax.experimental import pallas as pl
from jax.experimental.pallas import tpu as pltpu

LATENT_DIMS = 2
IN_FEATURES = 784   # 1 * 28 * 28
HIDDEN = 512
OUT_PAD = 128       # lane-dense output width (sliced back to LATENT_DIMS)


def _round_up(n, m):
    return (n + m - 1) // m * m


def _cdiv(n, m):
    return (n + m - 1) // m


def encoder_kernel(x_ref, w1_ref, b1_ref, w2_ref, b2_ref, out_ref):
    # Cast activations to bf16 in-kernel (cheap VPU work, overlapped with DMA),
    # MXU matmul with f32 accumulation, then f32 bias + ReLU on the VPU.
    x = x_ref[...].astype(jnp.bfloat16)                       # (TB, 784)
    h = jnp.dot(x, w1_ref[...], preferred_element_type=jnp.float32)
    h = jnp.maximum(h + b1_ref[...], 0.0)                     # (TB, 512) f32
    # Linear2 against the zero-padded (512, 128) weight -> lane-dense output.
    y = jnp.dot(h.astype(jnp.bfloat16), w2_ref[...],
                preferred_element_type=jnp.float32)
    out_ref[...] = (y + b2_ref[...]).astype(out_ref.dtype)


def encoder_forward(x_nchw, w1, b1, w2, b2, *, tile_b=1024):
    """x_nchw: (B, 1, 28, 28) float32 -> (B, LATENT_DIMS) float32.

    Weights are stored transposed vs. PyTorch: w1 (784, 512), w2 (512, 2).
    """
    B = x_nchw.shape[0]
    x_flat = x_nchw.reshape(B, -1).astype(jnp.float32)   # free reshape, no pad/copy
    assert x_flat.shape[1] == IN_FEATURES

    # Batch tile: big enough to amortize per-step overhead, but capped so the
    # grid has >= 2 steps whenever the batch allows it (v7x megacore), and
    # rounded to the 8-row sublane granule.
    TB = min(tile_b, max(8, _round_up(_cdiv(B, 2), 8)))
    grid = (_cdiv(B, TB),)    # cdiv grid: trailing tile is partial, not padded

    # Weights in bf16 (halves dominant weight DMA, bf16 MXU fast path);
    # biases stay f32.  w1 needs no feature-dim padding (784 % 8 == 0 and it
    # is the full dim); only w2/b2 are zero-padded to the lane-dense 128 width.
    w1_p = w1.astype(jnp.bfloat16)                              # (784, 512)
    b1_p = b1.reshape(1, HIDDEN).astype(jnp.float32)            # (1, 512)
    w2_p = jnp.zeros((HIDDEN, OUT_PAD), jnp.bfloat16)
    w2_p = w2_p.at[:, :LATENT_DIMS].set(w2.astype(jnp.bfloat16))
    b2_p = jnp.zeros((1, OUT_PAD), jnp.float32)
    b2_p = b2_p.at[:, :LATENT_DIMS].set(b2.astype(jnp.float32))

    cost = pl.CostEstimate(
        flops=2 * B * (IN_FEATURES * HIDDEN + HIDDEN * OUT_PAD),
        bytes_accessed=(x_flat.size * 4 + w1_p.size * 2 + w2_p.size * 2
                        + b1_p.size * 4 + b2_p.size * 4 + B * OUT_PAD * 4),
        transcendentals=0,
    )

    out_padded = pl.pallas_call(
        encoder_kernel,
        out_shape=jax.ShapeDtypeStruct((B, OUT_PAD), jnp.float32),
        grid=grid,
        in_specs=[
            # x tile, pipelined (double-buffered) along the batch grid axis.
            # Last dim == full array dim (784), so it is exempt from the 128 rule.
            pl.BlockSpec((TB, IN_FEATURES), lambda i: (i, 0)),
            # Weights / biases: constant index_map -> VMEM-resident, DMA'd once.
            pl.BlockSpec((IN_FEATURES, HIDDEN), lambda i: (0, 0)),
            pl.BlockSpec((1, HIDDEN), lambda i: (0, 0)),
            pl.BlockSpec((HIDDEN, OUT_PAD), lambda i: (0, 0)),
            pl.BlockSpec((1, OUT_PAD), lambda i: (0, 0)),
        ],
        out_specs=pl.BlockSpec((TB, OUT_PAD), lambda i: (i, 0)),
        compiler_params=pltpu.CompilerParams(
            dimension_semantics=("parallel",),
        ),
        cost_estimate=cost,
    )(x_flat, w1_p, b1_p, w2_p, b2_p)

    return out_padded[:, :LATENT_DIMS]


def init_params(key):
    """nn.Linear-style init (uniform +/- 1/sqrt(fan_in)); weights stored (in, out)."""
    k1, k2, k3, k4 = jax.random.split(key, 4)
    bound1 = 1.0 / jnp.sqrt(IN_FEATURES)
    bound2 = 1.0 / jnp.sqrt(HIDDEN)
    w1 = jax.random.uniform(k1, (IN_FEATURES, HIDDEN), jnp.float32, -bound1, bound1)
    b1 = jax.random.uniform(k2, (HIDDEN,), jnp.float32, -bound1, bound1)
    w2 = jax.random.uniform(k3, (HIDDEN, LATENT_DIMS), jnp.float32, -bound2, bound2)
    b2 = jax.random.uniform(k4, (LATENT_DIMS,), jnp.float32, -bound2, bound2)
    return w1, b1, w2, b2


if __name__ == "__main__":
    key = jax.random.PRNGKey(0)
    k_x, k_p = jax.random.split(key)

    # Small MNIST-like batch: (B, C, H, W) = (2, 1, 28, 28), implied by the 784 input dim.
    B = 2
    x = jax.random.normal(k_x, (B, 1, 28, 28), dtype=jnp.float32)
    w1, b1, w2, b2 = init_params(k_p)

    out = encoder_forward(x, w1, b1, w2, b2)
    out = jax.block_until_ready(out)
    assert out.shape == (B, LATENT_DIMS)

    # Reference with the same bf16-cast inputs (f32 accumulation), so tolerance
    # only needs to cover accumulation-order differences.
    xb = x.reshape(B, -1).astype(jnp.bfloat16).astype(jnp.float32)
    w1b = w1.astype(jnp.bfloat16).astype(jnp.float32)
    w2b = w2.astype(jnp.bfloat16).astype(jnp.float32)
    h_ref = jnp.maximum(xb @ w1b + b1, 0.0)
    ref = h_ref.astype(jnp.bfloat16).astype(jnp.float32) @ w2b + b2
    assert jnp.allclose(out, ref, atol=1e-2, rtol=1e-2), (out, ref)

    # Loose check against the pure-f32 math of the original module (bf16 cast noise).
    ref_f32 = jnp.maximum(x.reshape(B, -1) @ w1 + b1, 0.0) @ w2 + b2
    assert jnp.allclose(out, ref_f32, atol=5e-2, rtol=5e-2)

    print("KERNEL_OK")
</pallas_src>

<mosaic_0001>
module attributes {stable_mosaic.version = 11 : i64} {
  func.func @encoder_kernel(%arg0: i32, %arg1: memref<8x784xf32, #tpu.memory_space<vmem>>, %arg2: memref<784x512xbf16, #tpu.memory_space<vmem>>, %arg3: memref<1x512xf32, #tpu.memory_space<vmem>>, %arg4: memref<512x128xbf16, #tpu.memory_space<vmem>>, %arg5: memref<1x128xf32, #tpu.memory_space<vmem>>, %arg6: memref<8x128xf32, #tpu.memory_space<vmem>>) attributes {dimension_semantics = [#tpu.dimension_semantics<parallel>], iteration_bounds = array<i64: 1>, scalar_prefetch = 0 : i64, scratch_operands = 0 : i64, tpu.core_type = #tpu.core_type<tc>, window_params = [{transform_indices = @transform_0, window_bounds = array<i64: 8, 784>}, {pipeline_mode = #tpu.pipeline_mode<synchronous>, transform_indices = @transform_1, window_bounds = array<i64: 784, 512>}, {pipeline_mode = #tpu.pipeline_mode<synchronous>, transform_indices = @transform_2, window_bounds = array<i64: 1, 512>}, {pipeline_mode = #tpu.pipeline_mode<synchronous>, transform_indices = @transform_3, window_bounds = array<i64: 512, 128>}, {pipeline_mode = #tpu.pipeline_mode<synchronous>, transform_indices = @transform_4, window_bounds = array<i64: 1, 128>}, {transform_indices = @transform_5, window_bounds = array<i64: 8, 128>}]} {
    %c0 = arith.constant 0 : index
    %c0_0 = arith.constant 0 : index
    %0 = vector.load %arg1[%c0, %c0_0] : memref<8x784xf32, #tpu.memory_space<vmem>>, vector<8x784xf32>
    %1 = arith.truncf %0 : vector<8x784xf32> to vector<8x784xbf16>
    %c0_1 = arith.constant 0 : index
    %c0_2 = arith.constant 0 : index
    %2 = vector.load %arg2[%c0_1, %c0_2] : memref<784x512xbf16, #tpu.memory_space<vmem>>, vector<784x512xbf16>
    %cst = arith.constant dense<0.000000e+00> : vector<8x512xf32>
    %3 = tpu.matmul %1, %2, %cst {dimension_numbers = #tpu.dot_dimension_numbers<[1], [0], [0], [1], [0, 0, 1, 1], [], []>} : vector<8x784xbf16>, vector<784x512xbf16>, vector<8x512xf32> -> vector<8x512xf32>
    %c0_3 = arith.constant 0 : index
    %c0_4 = arith.constant 0 : index
    %4 = vector.load %arg3[%c0_3, %c0_4] : memref<1x512xf32, #tpu.memory_space<vmem>>, vector<1x512xf32>
    %5 = vector.broadcast %4 : vector<1x512xf32> to vector<8x512xf32>
    %6 = arith.addf %3, %5 : vector<8x512xf32>
    %cst_5 = arith.constant 0.000000e+00 : f32
    %7 = vector.broadcast %cst_5 : f32 to vector<8x512xf32>
    %8 = arith.maximumf %6, %7 : vector<8x512xf32>
    %9 = arith.truncf %8 : vector<8x512xf32> to vector<8x512xbf16>
    %c0_6 = arith.constant 0 : index
    %c0_7 = arith.constant 0 : index
    %10 = vector.load %arg4[%c0_6, %c0_7] : memref<512x128xbf16, #tpu.memory_space<vmem>>, vector<512x128xbf16>
    %cst_8 = arith.constant dense<0.000000e+00> : vector<8x128xf32>
    %11 = tpu.matmul %9, %10, %cst_8 {dimension_numbers = #tpu.dot_dimension_numbers<[1], [0], [0], [1], [0, 0, 1, 1], [], []>} : vector<8x512xbf16>, vector<512x128xbf16>, vector<8x128xf32> -> vector<8x128xf32>
    %c0_9 = arith.constant 0 : index
    %c0_10 = arith.constant 0 : index
    %12 = vector.load %arg5[%c0_9, %c0_10] : memref<1x128xf32, #tpu.memory_space<vmem>>, vector<1x128xf32>
    %13 = vector.broadcast %12 : vector<1x128xf32> to vector<8x128xf32>
    %14 = arith.addf %11, %13 : vector<8x128xf32>
    %c0_11 = arith.constant 0 : index
    %c0_12 = arith.constant 0 : index
    %15 = vector.load %arg6[%c0_11, %c0_12] : memref<8x128xf32, #tpu.memory_space<vmem>>, vector<8x128xf32>
    tpu.vector_store %arg6[%c0_11, %c0_12], %14 {strides = array<i32>} : memref<8x128xf32, #tpu.memory_space<vmem>>, vector<8x128xf32>,
    return
  }
  func.func @transform_0(%arg0: i32) -> (i32, i32) {
    %c0_i32 = arith.constant 0 : i32
    %c0_i32_0 = arith.constant 0 : i32
    return %arg0, %c0_i32 : i32, i32
  }
  func.func @transform_1(%arg0: i32) -> (i32, i32) {
    %c0_i32 = arith.constant 0 : i32
    %c0_i32_0 = arith.constant 0 : i32
    %c0_i32_1 = arith.constant 0 : i32
    return %c0_i32, %c0_i32_0 : i32, i32
  }
  func.func @transform_2(%arg0: i32) -> (i32, i32) {
    %c0_i32 = arith.constant 0 : i32
    %c0_i32_0 = arith.constant 0 : i32
    %c0_i32_1 = arith.constant 0 : i32
    return %c0_i32, %c0_i32_0 : i32, i32
  }
  func.func @transform_3(%arg0: i32) -> (i32, i32) {
    %c0_i32 = arith.constant 0 : i32
    %c0_i32_0 = arith.constant 0 : i32
    %c0_i32_1 = arith.constant 0 : i32
    return %c0_i32, %c0_i32_0 : i32, i32
  }
  func.func @transform_4(%arg0: i32) -> (i32, i32) {
    %c0_i32 = arith.constant 0 : i32
    %c0_i32_0 = arith.constant 0 : i32
    %c0_i32_1 = arith.constant 0 : i32
    return %c0_i32, %c0_i32_0 : i32, i32
  }
  func.func @transform_5(%arg0: i32) -> (i32, i32) {
    %c0_i32 = arith.constant 0 : i32
    %c0_i32_0 = arith.constant 0 : i32
    return %arg0, %c0_i32 : i32, i32
  }
}

</mosaic_0001>

<bundles_post_ra>
// kernel: tpu_custom_call.1
= control target key start
LH: loop header
LB: loop body
LE: loop exit
PB: predicated region body
PF: predicated region fallthrough
CT: control target
= control target key end

     0   :  { %10 = vsyncpa [#allocation3], 0  ;;  %s3442_s0 = inlined_call_operand.hbm [shape: f32[2,784], index: 0, kind: input, shape index: {}]   ;;  %s3443_s1 = inlined_call_operand.hbm [shape: bf16[784,512], index: 1, kind: input, shape index: {}]   ;;  %s3444_s2 = inlined_call_operand.hbm [shape: f32[1,512], index: 2, kind: input, shape index: {}]   ;;  %s3445_s3 = inlined_call_operand.hbm [shape: bf16[512,128], index: 3, kind: input, shape index: {}]   ;;  %s3446_s4 = inlined_call_operand.vmem [shape: f32[1,128], index: 4, kind: input, shape index: {}]   ;;  %s3447_s5 = inlined_call_operand.hbm [shape: f32[2,128], index: 5, kind: output, shape index: {}]  }
   0x1   :  { %11 = vsyncpa [#allocation6], 0 }
   0x2   :  { %12 = vsyncpa [#allocation9], 0 }
   0x3   :  { %13 = vsyncpa [#allocation4], 0  ;;  %s31_s20 = sshll.u32 %s3443_s1, 4  ;;  %s32_s20 = int_to_ptr.hbm [resolvable:$true] %s31_s20 }
   0x4   :  { %17 = vsyncadd [#allocation3], 672  ;;  %s3317_s21 = smov [#allocation5]   ;;  %s18_s25 = sshll.u32 %s3442_s0, 4  ;;  %s19_s25 = int_to_ptr.hbm [resolvable:$true] %s18_s25 }
   0x5   :  { %s33_s22 = sshll.u32 %s3317_s21, 4  ;;  %s3318_s26 = smov 256   ;;  %s34_s22 = int_to_ptr.vmem [resolvable:$true] %s33_s22 }
   0x6   :  { %s3319_s27 = smov 16   ;;  %s3320_s28 = smov [#allocation2]  }
   0x7   :  { %39 = dma.hbm_to_vmem [thread:$0]  %s32_s20, 25088, %s34_s22, [#allocation6], %s3318_s26, %s3318_s26, %s3319_s27  }
   0x8   :  { %s20_s29 = sshll.u32 %s3320_s28, 4  ;;  %s3321_s30 = smov 224   ;;  %s21_s29 = int_to_ptr.vmem [resolvable:$true] %s20_s29 }
   0x9   :  { %s3322_s6 = smov 14   ;;  %s45_s8 = sshll.u32 %s3444_s2, 4  ;;  %s46_s8 = int_to_ptr.hbm [resolvable:$true] %s45_s8 }
   0xa   :  { %26 = dma.hbm_to_vmem [thread:$0]  %s19_s25, 224, %s21_s29, [#allocation3], %s3321_s30, %s3321_s30, %s3322_s6  }
   0xb   :  { %s3323_s9 = smov [#allocation7]   ;;  %s55_s12 = sshll.u32 %s3445_s3, 4  ;;  %s56_s12 = int_to_ptr.hbm [resolvable:$true] %s55_s12 }
   0xc   :  { %s47_s10 = sshll.u32 %s3323_s9, 4  ;;  %s3324_s13 = smov [#allocation8]   ;;  %s48_s10 = int_to_ptr.vmem [resolvable:$true] %s47_s10 }
   0xd   :  { %50 = dma.hbm_to_vmem [thread:$0]  %s46_s8, 64, %s48_s10, [#allocation6]  }
   0xe   :  { %s57_s14 = sshll.u32 %s3324_s13, 4  ;;  %s3325_s15 = smov 64   ;;  %s58_s14 = int_to_ptr.vmem [resolvable:$true] %s57_s14 }
   0xf   :  { %s3326_s16 = smov 4  }
  0x10   :  { %63 = dma.hbm_to_vmem [thread:$0]  %s56_s12, 4096, %s58_s14, [#allocation9], %s3325_s15, %s3325_s15, %s3326_s16  }
  0x11   :  { %3309 = dma.done.wait [#allocation3], 896  }
  0x12   :  { %3310 = vsyncadd [#allocation3], 4294966400 }
  0x13   :  { %3311 = dma.done.wait [#allocation6], 25152  }
  0x14   :  { %3312 = vsyncadd [#allocation6], 4294942144 }
  0x15   :  { %3313 = dma.done.wait [#allocation9], 4096  }
  0x16   :  { %3314 = vsyncadd [#allocation9], 4294963200  ;;  %v2145_v0 = vld [vmem:[#allocation5 + $0xe0] sm:$0xf]  ;;  %v2977_v1 = vld [vmem:[#allocation5 + $0xec] sm:$0xf0] }
  0x17   :  { %v2273_v2 = vld [vmem:[#allocation5 + $0x1e0] sm:$0xf]  ;;  %v2146_v3 = vor.u32 %v2977_v1, %v2145_v0  ;;  %v3009_v4 = vld [vmem:[#allocation5 + $0x1ec] sm:$0xf0]  ;;  %vm1321_vm0 = vcmask 130048  }
  0x18   :  { %v2401_v5 = vld [vmem:[#allocation5 + $0x2e0] sm:$0xf]  ;;  %v3041_v6 = vld [vmem:[#allocation5 + $0x2ec] sm:$0xf0]  ;;  %v2274_v7 = vor.u32 %v3009_v4, %v2273_v2 }
  0x19   :  { %v2402_v8 = vor.u32 %v3041_v6, %v2401_v5  ;;  %v2529_v9 = vld [vmem:[#allocation5 + $0x3e0] sm:$0xf]  ;;  %v3073_v10 = vld [vmem:[#allocation5 + $0x3ec] sm:$0xf0]  ;;  %1325 = vmatpush.bf16.msra.mxu0 %v2146_v3 }
  0x1a   :  { %v2129_v11 = vld [vmem:[#allocation5 + $0xc0] sm:$0xf]  ;;  %v2530_v12 = vor.u32 %v3073_v10, %v2529_v9  ;;  %v2973_v13 = vld [vmem:[#allocation5 + $0xcc] sm:$0xf0]  ;;  %1338 = vmatpush.bf16.msra.mxu1 %v2274_v7 }
  0x1b   :  { %v2257_v14 = vld [vmem:[#allocation5 + $0x1c0] sm:$0xf]  ;;  %v3005_v15 = vld [vmem:[#allocation5 + $0x1cc] sm:$0xf0]  ;;  %1351 = vmatpush.bf16.msra.mxu2 %v2402_v8  ;;  %v2130_v16 = vor.u32 %v2973_v13, %v2129_v11 }
  0x1c   :  { %v2258_v17 = vor.u32 %v3005_v15, %v2257_v14  ;;  %v2385_v18 = vld [vmem:[#allocation5 + $0x2c0] sm:$0xf]  ;;  %v3037_v19 = vld [vmem:[#allocation5 + $0x2cc] sm:$0xf0]  ;;  %1364 = vmatpush.bf16.msra.mxu3 %v2530_v12 }
  0x1d   :  { %v2513_v20 = vld [vmem:[#allocation5 + $0x3c0] sm:$0xf]  ;;  %v2386_v21 = vor.u32 %v3037_v19, %v2385_v18  ;;  %v3069_v22 = vld [vmem:[#allocation5 + $0x3cc] sm:$0xf0]  ;;  %1326 = vmatpush.bf16.msra.mxu0 %v2130_v16 }
  0x1e   :  { %v2113_v23 = vld [vmem:[#allocation5 + $0xa0] sm:$0xf]  ;;  %v2969_v24 = vld [vmem:[#allocation5 + $0xac] sm:$0xf0]  ;;  %v2514_v25 = vor.u32 %v3069_v22, %v2513_v20  ;;  %1339 = vmatpush.bf16.msra.mxu1 %v2258_v17 }
  0x1f   :  { %v2241_v26 = vld [vmem:[#allocation5 + $0x1a0] sm:$0xf]  ;;  %v3001_v27 = vld [vmem:[#allocation5 + $0x1ac] sm:$0xf0]  ;;  %v2114_v29 = vor.u32 %v2969_v24, %v2113_v23  ;;  %1352 = vmatpush.bf16.msra.mxu2 %v2386_v21  ;;  %v83_v23 = vld [vmem:[#allocation2] sm:$0xff] }
  0x20   :  { %v2369_v28 = vld [vmem:[#allocation5 + $0x2a0] sm:$0xf]  ;;  %v3033_v30 = vld [vmem:[#allocation5 + $0x2ac] sm:$0xf0]  ;;  %v2242_v33 = vor.u32 %v3001_v27, %v2241_v26  ;;  %1365 = vmatpush.bf16.msra.mxu3 %v2514_v25  ;;  %v85_v24 = vld [vmem:[#allocation2 + $0xe] sm:$0xff] }
  0x21   :  { %v2497_v31 = vld [vmem:[#allocation5 + $0x3a0] sm:$0xf]  ;;  %v3065_v32 = vld [vmem:[#allocation5 + $0x3ac] sm:$0xf0]  ;;  %v2370_v34 = vor.u32 %v3033_v30, %v2369_v28  ;;  %1327 = vmatpush.bf16.msra.mxu0 %v2114_v29  ;;  %v87_v29 = vld [vmem:[#allocation2 + $0x1c] sm:$0xff] }
  0x22   :  { %v2097_v35 = vld [vmem:[#allocation5 + $0x80] sm:$0xf]  ;;  %v2965_v36 = vld [vmem:[#allocation5 + $0x8c] sm:$0xf0]  ;;  %v2498_v38 = vor.u32 %v3065_v32, %v2497_v31  ;;  %1340 = vmatpush.bf16.msra.mxu1 %v2242_v33  ;;  %99 = vst [vmem:[#allocation1] ss:$4 sm:$0xff] %v83_v23 }
  0x23   :  { %v2225_v37 = vld [vmem:[#allocation5 + $0x180] sm:$0xf]  ;;  %v2997_v39 = vld [vmem:[#allocation5 + $0x18c] sm:$0xf0]  ;;  %v2098_v44 = vor.u32 %v2965_v36, %v2097_v35  ;;  %1353 = vmatpush.bf16.msra.mxu2 %v2370_v34  ;;  %101 = vst [vmem:[#allocation1 + $0x1] ss:$4 sm:$0xff] %v85_v24 }
  0x24   :  { %v2353_v40 = vld [vmem:[#allocation5 + $0x280] sm:$0xf]  ;;  %v3029_v41 = vld [vmem:[#allocation5 + $0x28c] sm:$0xf0]  ;;  %v2226_v45 = vor.u32 %v2997_v39, %v2225_v37  ;;  %1366 = vmatpush.bf16.msra.mxu3 %v2498_v38  ;;  %103 = vst [vmem:[#allocation1 + $0x2] ss:$4 sm:$0xff] %v87_v29 }
  0x25   :  { %v2481_v42 = vld [vmem:[#allocation5 + $0x380] sm:$0xf]  ;;  %v3061_v43 = vld [vmem:[#allocation5 + $0x38c] sm:$0xf0]  ;;  %v2354_v46 = vor.u32 %v3029_v41, %v2353_v40  ;;  %1328 = vmatpush.bf16.msra.mxu0 %v2098_v44  ;;  %v2975_v37 = vld [vmem:[#allocation5 + $0xe4] sm:$0xf] }
  0x26   :  { %v2081_v47 = vld [vmem:[#allocation5 + $0x60] sm:$0xf]  ;;  %v2961_v48 = vld [vmem:[#allocation5 + $0x6c] sm:$0xf0]  ;;  %v2482_v50 = vor.u32 %v3061_v43, %v2481_v42  ;;  %1341 = vmatpush.bf16.msra.mxu1 %v2226_v45  ;;  %v2147_v38 = vld [vmem:[#allocation5 + $0xf0] sm:$0xf0] }
  0x27   :  { %v2209_v49 = vld [vmem:[#allocation5 + $0x160] sm:$0xf]  ;;  %v2993_v51 = vld [vmem:[#allocation5 + $0x16c] sm:$0xf0]  ;;  %v2082_v56 = vor.u32 %v2961_v48, %v2081_v47  ;;  %1354 = vmatpush.bf16.msra.mxu2 %v2354_v46  ;;  %v2150_v46 = vor.u32 %v2975_v37, %v2147_v38  ;;  %v3007_v47 = vld [vmem:[#allocation5 + $0x1e4] sm:$0xf] }
  0x28   :  { %v2337_v52 = vld [vmem:[#allocation5 + $0x260] sm:$0xf]  ;;  %v3025_v53 = vld [vmem:[#allocation5 + $0x26c] sm:$0xf0]  ;;  %v2210_v57 = vor.u32 %v2993_v51, %v2209_v49  ;;  %1367 = vmatpush.bf16.msra.mxu3 %v2482_v50  ;;  %v2275_v51 = vld [vmem:[#allocation5 + $0x1f0] sm:$0xf0] }
  0x29   :  { %v2465_v54 = vld [vmem:[#allocation5 + $0x360] sm:$0xf]  ;;  %v3057_v55 = vld [vmem:[#allocation5 + $0x36c] sm:$0xf0]  ;;  %v2338_v58 = vor.u32 %v3025_v53, %v2337_v52  ;;  %1329 = vmatpush.bf16.msra.mxu0 %v2082_v56  ;;  %v2099_v23 = vld [vmem:[#allocation5 + $0x90] sm:$0xf0] }
  0x2a   :  { %v2065_v59 = vld [vmem:[#allocation5 + $0x40] sm:$0xf]  ;;  %v2957_v60 = vld [vmem:[#allocation5 + $0x4c] sm:$0xf0]  ;;  %v2466_v62 = vor.u32 %v3057_v55, %v2465_v54  ;;  %1342 = vmatpush.bf16.msra.mxu1 %v2210_v57  ;;  %v2971_v54 = vld [vmem:[#allocation5 + $0xc4] sm:$0xf] }
  0x2b   :  { %v2193_v61 = vld [vmem:[#allocation5 + $0x140] sm:$0xf]  ;;  %v2989_v63 = vld [vmem:[#allocation5 + $0x14c] sm:$0xf0]  ;;  %v2066_v4 = vor.u32 %v2957_v60, %v2065_v59  ;;  %1355 = vmatpush.bf16.msra.mxu2 %v2338_v58  ;;  %v2131_v55 = vld [vmem:[#allocation5 + $0xd0] sm:$0xf0] }
  0x2c   :  { %v2321_v0 = vld [vmem:[#allocation5 + $0x240] sm:$0xf]  ;;  %v3021_v1 = vld [vmem:[#allocation5 + $0x24c] sm:$0xf0]  ;;  %v2194_v6 = vor.u32 %v2989_v63, %v2193_v61  ;;  %1368 = vmatpush.bf16.msra.mxu3 %v2466_v62  ;;  %v3003_v58 = vld [vmem:[#allocation5 + $0x1c4] sm:$0xf] }
  0x2d   :  { %v2449_v2 = vld [vmem:[#allocation5 + $0x340] sm:$0xf]  ;;  %v3053_v3 = vld [vmem:[#allocation5 + $0x34c] sm:$0xf0]  ;;  %v2322_v7 = vor.u32 %v3021_v1, %v2321_v0  ;;  %1330 = vmatpush.bf16.msra.mxu0 %v2066_v4  ;;  %v2259_v59 = vld [vmem:[#allocation5 + $0x1d0] sm:$0xf0]  ;;  %v2278_v0 = vor.u32 %v3007_v47, %v2275_v51  ;;  %v2134_v4 = vor.u32 %v2971_v54, %v2131_v55 }
  0x2e   :  { %v2049_v5 = vld [vmem:[#allocation5 + $0x20] sm:$0xf]  ;;  %v2953_v8 = vld [vmem:[#allocation5 + $0x2c] sm:$0xf0]  ;;  %v2450_v11 = vor.u32 %v3053_v3, %v2449_v2  ;;  %1343 = vmatpush.bf16.msra.mxu1 %v2194_v6  ;;  %v2067_v51 = vld [vmem:[#allocation5 + $0x50] sm:$0xf0] }
  0x2f   :  { %v2177_v9 = vld [vmem:[#allocation5 + $0x120] sm:$0xf]  ;;  %v2985_v10 = vld [vmem:[#allocation5 + $0x12c] sm:$0xf0]  ;;  %v2050_v18 = vor.u32 %v2953_v8, %v2049_v5  ;;  %1356 = vmatpush.bf16.msra.mxu2 %v2322_v7  ;;  %v2987_v55 = vld [vmem:[#allocation5 + $0x144] sm:$0xf] }
  0x30   :  { %v2305_v12 = vld [vmem:[#allocation5 + $0x220] sm:$0xf]  ;;  %v3017_v13 = vld [vmem:[#allocation5 + $0x22c] sm:$0xf0]  ;;  %v2178_v25 = vor.u32 %v2985_v10, %v2177_v9  ;;  %1369 = vmatpush.bf16.msra.mxu3 %v2450_v11  ;;  %v2967_v9 = vld [vmem:[#allocation5 + $0xa4] sm:$0xf] }
  0x31   :  { %v2433_v14 = vld [vmem:[#allocation5 + $0x320] sm:$0xf]  ;;  %v3049_v15 = vld [vmem:[#allocation5 + $0x32c] sm:$0xf0]  ;;  %v2306_v26 = vor.u32 %v3017_v13, %v2305_v12  ;;  %1331 = vmatpush.bf16.msra.mxu0 %v2050_v18  ;;  %v2115_v10 = vld [vmem:[#allocation5 + $0xb0] sm:$0xf0]  ;;  %v2262_v13 = vor.u32 %v3003_v58, %v2259_v59 }
  0x32   :  { %v2033_v16 = vld [vmem:[#allocation5] sm:$0xf]  ;;  %v2949_v17 = vld [vmem:[#allocation5 + $0xc] sm:$0xf0]  ;;  %v2434_v31 = vor.u32 %v3049_v15, %v2433_v14  ;;  %1344 = vmatpush.bf16.msra.mxu1 %v2178_v25  ;;  %v2999_v15 = vld [vmem:[#allocation5 + $0x1a4] sm:$0xf]  ;;  %v2118_v18 = vor.u32 %v2967_v9, %v2115_v10 }
  0x33   :  { %v2161_v19 = vld [vmem:[#allocation5 + $0x100] sm:$0xf]  ;;  %v2981_v20 = vld [vmem:[#allocation5 + $0x10c] sm:$0xf0]  ;;  %v2034_v36 = vor.u32 %v2949_v17, %v2033_v16  ;;  %1357 = vmatpush.bf16.msra.mxu2 %v2306_v26  ;;  %v2995_v25 = vld [vmem:[#allocation5 + $0x184] sm:$0xf] }
  0x34   :  { %v2289_v21 = vld [vmem:[#allocation5 + $0x200] sm:$0xf]  ;;  %v3013_v22 = vld [vmem:[#allocation5 + $0x20c] sm:$0xf0]  ;;  %v2162_v39 = vor.u32 %v2981_v20, %v2161_v19  ;;  %1370 = vmatpush.bf16.msra.mxu3 %v2434_v31  ;;  %v2243_v19 = vld [vmem:[#allocation5 + $0x1b0] sm:$0xf0] }
  0x35   :  { %v2417_v27 = vld [vmem:[#allocation5 + $0x300] sm:$0xf]  ;;  %v3045_v28 = vld [vmem:[#allocation5 + $0x30c] sm:$0xf0]  ;;  %v2290_v40 = vor.u32 %v3013_v22, %v2289_v21  ;;  %1332 = vmatpush.bf16.msra.mxu0 %v2034_v36  ;;  %v2963_v22 = vld [vmem:[#allocation5 + $0x84] sm:$0xf]  ;;  %v2246_v26 = vor.u32 %v2999_v15, %v2243_v19 }
  0x36   :  { %v89_v30 = vld [vmem:[#allocation2 + $0x2a] sm:$0xff]  ;;  %v2657_v32 = vld [vmem:[#allocation5 + $0x4e0] sm:$0xf]  ;;  %v2418_v43 = vor.u32 %v3045_v28, %v2417_v27  ;;  %1345 = vmatpush.bf16.msra.mxu1 %v2162_v39  ;;  %v2102_v31 = vor.u32 %v2963_v22, %v2099_v23  ;;  %v2991_v39 = vld [vmem:[#allocation5 + $0x164] sm:$0xf] }
  0x37   :  { %v3105_v33 = vld [vmem:[#allocation5 + $0x4ec] sm:$0xf0]  ;;  %v2785_v34 = vld [vmem:[#allocation5 + $0x5e0] sm:$0xf]  ;;  %105 = vst [vmem:[#allocation1 + $0x3] ss:$4 sm:$0xff] %v89_v30  ;;  %1358 = vmatpush.bf16.msra.mxu2 %v2290_v40 }
  0x38   :  { %v3137_v35 = vld [vmem:[#allocation5 + $0x5ec] sm:$0xf0]  ;;  %v2801_v41 = vld [vmem:[#allocation5 + $0x600] sm:$0xf]  ;;  %v2658_v44 = vor.u32 %v3105_v33, %v2657_v32  ;;  %1371 = vmatpush.bf16.msra.mxu3 %v2418_v43  ;;  %v2227_v28 = vld [vmem:[#allocation5 + $0x190] sm:$0xf0] }
  0x39   :  { %v3141_v42 = vld [vmem:[#allocation5 + $0x60c] sm:$0xf0]  ;;  %v2786_v45 = vor.u32 %v3137_v35, %v2785_v34  ;;  %v2641_v48 = vld [vmem:[#allocation5 + $0x4c0] sm:$0xf]  ;;  %v2959_v34 = vld [vmem:[#allocation5 + $0x64] sm:$0xf]  ;;  %v2230_v43 = vor.u32 %v2995_v25, %v2227_v28 }
  0x3a   :  { %v3101_v49 = vld [vmem:[#allocation5 + $0x4cc] sm:$0xf0]  ;;  %v2802_v50 = vor.u32 %v3141_v42, %v2801_v41  ;;  %v2769_v52 = vld [vmem:[#allocation5 + $0x5c0] sm:$0xf]  ;;  %1377 = vmatpush.bf16.msrb.mxu0 %v2658_v44  ;;  %v2083_v35 = vld [vmem:[#allocation5 + $0x70] sm:$0xf0] }
  0x3b   :  { %v3133_v53 = vld [vmem:[#allocation5 + $0x5cc] sm:$0xf0]  ;;  %v2625_v56 = vld [vmem:[#allocation5 + $0x4a0] sm:$0xf]  ;;  %v2642_v57 = vor.u32 %v3101_v49, %v2641_v48  ;;  %1390 = vmatpush.bf16.msrb.mxu1 %v2786_v45  ;;  %v2211_v40 = vld [vmem:[#allocation5 + $0x170] sm:$0xf0]  ;;  %v2086_v47 = vor.u32 %v2959_v34, %v2083_v35 }
  0x3c   :  { %v3097_v60 = vld [vmem:[#allocation5 + $0x4ac] sm:$0xf0]  ;;  %v2753_v61 = vld [vmem:[#allocation5 + $0x5a0] sm:$0xf]  ;;  %1416 = vmatpush.bf16.msrb.mxu3 %v2150_v46  ;;  %v2770_v1 = vor.u32 %v3133_v53, %v2769_v52  ;;  %1410 = vmatpush.bf16.msrb.mxu2 %v2802_v50  ;;  %v90_v42 = vld [vmem:[#allocation2 + $0x32] sm:$0x3f]  ;;  %v2214_v53 = vor.u32 %v2991_v39, %v2211_v40 }
  0x3d   :  { %v3129_v62 = vld [vmem:[#allocation5 + $0x5ac] sm:$0xf0]  ;;  %v2626_v12 = vor.u32 %v3097_v60, %v2625_v56  ;;  %v2609_v16 = vld [vmem:[#allocation5 + $0x480] sm:$0xf]  ;;  %v2955_v50 = vld [vmem:[#allocation5 + $0x44] sm:$0xf] }
  0x3e   :  { %v116_v63 = vld.sshfl [vmem:[#allocation1 + $0x10] sm:$0xff pattern:$0x73625140]  ;;  %v114_v2 = vld.sshfl [vmem:[#allocation1] sm:$0xff pattern:$0x73625140]  ;;  %1378 = vmatpush.bf16.msrb.mxu0 %v2642_v57  ;;  %v2754_v14 = vor.u32 %v3129_v62, %v2753_v61  ;;  %v2070_v58 = vor.u32 %v2955_v50, %v2067_v51 }
  0x3f   :  { %v3372_v3 = vpack.c.bf16 %v116_v63, %v116_v63  ;;  %v3374_v5 = vpack.c.bf16 %v114_v2, %v114_v2  ;;  %v117_v6 = vld.sshfl [vmem:[#allocation1 + $0x18] sm:$0xff pattern:$0x73625140]  ;;  %v115_v7 = vld.sshfl [vmem:[#allocation1 + $0x8] sm:$0xff pattern:$0x73625140]  ;;  %1391 = vmatpush.bf16.msrb.mxu1 %v2770_v1 }
  0x40   :  { %v3376_v8 = vpack.c.bf16 %v117_v6, %v117_v6  ;;  %v3378_v11 = vpack.c.bf16 %v115_v7, %v115_v7  ;;  %v3093_v17 = vld [vmem:[#allocation5 + $0x48c] sm:$0xf0]  ;;  %1417 = vmatpush.bf16.msrb.mxu3 %v2134_v4  ;;  %v2737_v20 = vld [vmem:[#allocation5 + $0x580] sm:$0xf]  ;;  %113 = vst [vmem:[#allocation1 + $0x23] ss:$4 sm:$0xff] %v90_v42 }
  0x41   :  { %1359 = vmatmul.bf16.vlgmr.msra.gmra.mxu2 %v3372_v3  ;;  %1333 = vmatmul.bf16.vlgmr.msra.gmra.mxu0 %v3374_v5  ;;  %v3125_v21 = vld [vmem:[#allocation5 + $0x58c] sm:$0xf0]  ;;  %v2610_v24 = vor.u32 %v3093_v17, %v2609_v16  ;;  %v2593_v29 = vld [vmem:[#allocation5 + $0x460] sm:$0xf]  ;;  %v2195_v59 = vld [vmem:[#allocation5 + $0x150] sm:$0xf0] }
  0x42   :  { %1429 = vmatpush.bf16.msra.mxu2 %v2278_v0  ;;  %1372 = vmatmul.bf16.vlgmr.msra.gmra.mxu3 %v3376_v8  ;;  %v2738_v27 = vor.u32 %v3125_v21, %v2737_v20  ;;  %v3089_v30 = vld [vmem:[#allocation5 + $0x46c] sm:$0xf0]  ;;  %v2721_v32 = vld [vmem:[#allocation5 + $0x560] sm:$0xf]  ;;  %v2951_v62 = vld [vmem:[#allocation5 + $0x24] sm:$0xf]  ;;  %v2198_v9 = vor.u32 %v2987_v55, %v2195_v59 }
  0x43   :  { %1346 = vmatmul.bf16.vlgmr.msra.gmra.mxu1 %v3378_v11  ;;  %1379 = vmatpush.bf16.msrb.mxu0 %v2626_v12  ;;  %v3121_v33 = vld [vmem:[#allocation5 + $0x56c] sm:$0xf0]  ;;  %v86_v37 = vld [vmem:[#allocation2 + $0x16] sm:$0x3f]  ;;  %v2594_v38 = vor.u32 %v3089_v30, %v2593_v29  ;;  %v2051_v63 = vld [vmem:[#allocation5 + $0x30] sm:$0xf0] }
  0x44   :  { %1392 = vmatpush.bf16.msrb.mxu1 %v2754_v14  ;;  %1418 = vmatpush.bf16.msrb.mxu3 %v2118_v18  ;;  %v84_v36 = vld [vmem:[#allocation2 + $0x8] sm:$0x3f]  ;;  %v2722_v44 = vor.u32 %v3121_v33, %v2721_v32  ;;  %v2577_v45 = vld [vmem:[#allocation5 + $0x440] sm:$0xf]  ;;  %109 = vst [vmem:[#allocation1 + $0x21] ss:$4 sm:$0xff] %v86_v37  ;;  %v2054_v15 = vor.u32 %v2951_v62, %v2051_v63 }
  0x45   :  { %v88_v41 = vld [vmem:[#allocation2 + $0x24] sm:$0x3f]  ;;  %107 = vst [vmem:[#allocation1 + $0x20] ss:$4 sm:$0xff] %v84_v36  ;;  %v2705_v48 = vld [vmem:[#allocation5 + $0x540] sm:$0xf] }
  0x46   :  { %1430 = vmatpush.bf16.msra.mxu2 %v2262_v13  ;;  %v3085_v46 = vld [vmem:[#allocation5 + $0x44c] sm:$0xf0]  ;;  %111 = vst [vmem:[#allocation1 + $0x22] ss:$4 sm:$0xff] %v88_v41  ;;  %v2561_v56 = vld [vmem:[#allocation5 + $0x420] sm:$0xf] }
  0x47   :  { %1380 = vmatpush.bf16.msrb.mxu0 %v2610_v24  ;;  %v3117_v49 = vld [vmem:[#allocation5 + $0x54c] sm:$0xf0]  ;;  %v2578_v52 = vor.u32 %v3085_v46, %v2577_v45  ;;  %v2689_v60 = vld [vmem:[#allocation5 + $0x520] sm:$0xf]  ;;  %v2983_v1 = vld [vmem:[#allocation5 + $0x124] sm:$0xf] }
  0x48   :  { %1393 = vmatpush.bf16.msrb.mxu1 %v2738_v27  ;;  %1419 = vmatpush.bf16.msrb.mxu3 %v2102_v31  ;;  %v2706_v54 = vor.u32 %v3117_v49, %v2705_v48  ;;  %v3081_v57 = vld [vmem:[#allocation5 + $0x42c] sm:$0xf0]  ;;  %v2179_v2 = vld [vmem:[#allocation5 + $0x130] sm:$0xf0]  ;;  %v2545_v4 = vld [vmem:[#allocation5 + $0x400] sm:$0xf] }
  0x49   :  { %v3113_v61 = vld [vmem:[#allocation5 + $0x52c] sm:$0xf0]  ;;  %v2562_v0 = vor.u32 %v3081_v57, %v2561_v56  ;;  %v2673_v7 = vld [vmem:[#allocation5 + $0x500] sm:$0xf]  ;;  %v2947_v13 = vld [vmem:[#allocation5 + $0x4] sm:$0xf] }
  0x4a   :  { %1431 = vmatpush.bf16.msra.mxu2 %v2246_v26  ;;  %v3077_v6 = vld [vmem:[#allocation5 + $0x40c] sm:$0xf0]  ;;  %v2690_v10 = vor.u32 %v3113_v61, %v2689_v60  ;;  %v2035_v14 = vld [vmem:[#allocation5 + $0x10] sm:$0xf0]  ;;  %v3039_v17 = vld [vmem:[#allocation5 + $0x2e4] sm:$0xf]  ;;  %v2182_v26 = vor.u32 %v2983_v1, %v2179_v2 }
  0x4b   :  { %1381 = vmatpush.bf16.msrb.mxu0 %v2594_v38  ;;  %v3109_v12 = vld [vmem:[#allocation5 + $0x50c] sm:$0xf0]  ;;  %v2403_v19 = vld [vmem:[#allocation5 + $0x2f0] sm:$0xf0]  ;;  %v3071_v20 = vld [vmem:[#allocation5 + $0x3e4] sm:$0xf]  ;;  %v2546_v22 = vor.u32 %v3077_v6, %v2545_v4  ;;  %v2038_v30 = vor.u32 %v2947_v13, %v2035_v14 }
  0x4c   :  { %1394 = vmatpush.bf16.msrb.mxu1 %v2722_v44  ;;  %1420 = vmatpush.bf16.msrb.mxu3 %v2086_v47  ;;  %v2531_v21 = vld [vmem:[#allocation5 + $0x3f0] sm:$0xf0]  ;;  %v3103_v23 = vld [vmem:[#allocation5 + $0x4e4] sm:$0xf]  ;;  %v2674_v27 = vor.u32 %v3109_v12, %v2673_v7  ;;  %v2406_v31 = vor.u32 %v3039_v17, %v2403_v19 }
  0x4d   :  { %v120_v16 = vld.sshfl [vmem:[#allocation1 + $0x30] sm:$0xff pattern:$0x73625140]  ;;  %v2979_v25 = vld [vmem:[#allocation5 + $0x104] sm:$0xf]  ;;  %v2534_v35 = vor.u32 %v3071_v20, %v2531_v21 }
  0x4e   :  { %1432 = vmatpush.bf16.msra.mxu2 %v2230_v43  ;;  %v3384_v18 = vpack.c.bf16 %v120_v16, %v120_v16  ;;  %v2659_v24 = vld [vmem:[#allocation5 + $0x4f0] sm:$0xf0]  ;;  %v118_v28 = vld.sshfl [vmem:[#allocation1 + $0x20] sm:$0xff pattern:$0x73625140] }
  0x4f   :  { %1382 = vmatpush.bf16.msrb.mxu0 %v2578_v52  ;;  %v119_v29 = vld.sshfl [vmem:[#allocation1 + $0x28] sm:$0xff pattern:$0x73625140]  ;;  %v2163_v32 = vld [vmem:[#allocation5 + $0x110] sm:$0xf0]  ;;  %v2662_v36 = vor.u32 %v3103_v23, %v2659_v24  ;;  %v3388_v40 = vpack.c.bf16 %v118_v28, %v118_v28 }
  0x50   :  { %1395 = vmatpush.bf16.msrb.mxu1 %v2706_v54  ;;  %1421 = vmatpush.bf16.msrb.mxu3 %v2070_v58  ;;  %v3135_v33 = vld [vmem:[#allocation5 + $0x5e4] sm:$0xf]  ;;  %v2787_v34 = vld [vmem:[#allocation5 + $0x5f0] sm:$0xf0]  ;;  %v3390_v41 = vpack.c.bf16 %v119_v29, %v119_v29  ;;  %v2166_v45 = vor.u32 %v2979_v25, %v2163_v32 }
  0x51   :  { %2815 = vmatmul.msk.bf16.vlgmr.msrb.gmra.mxu2 %vm1321_vm0, %v3384_v18  ;;  %v3035_v37 = vld [vmem:[#allocation5 + $0x2c4] sm:$0xf]  ;;  %v2387_v38 = vld [vmem:[#allocation5 + $0x2d0] sm:$0xf0]  ;;  %v2790_v46 = vor.u32 %v3135_v33, %v2787_v34 }
  0x52   :  { %1433 = vmatpush.bf16.msra.mxu2 %v2214_v53  ;;  %v3067_v39 = vld [vmem:[#allocation5 + $0x3c4] sm:$0xf]  ;;  %v2515_v42 = vld [vmem:[#allocation5 + $0x3d0] sm:$0xf0]  ;;  %v2390_v47 = vor.u32 %v3035_v37, %v2387_v38 }
  0x53   :  { %1383 = vmatpush.bf16.msrb.mxu0 %v2562_v0  ;;  %v3099_v43 = vld [vmem:[#allocation5 + $0x4c4] sm:$0xf]  ;;  %v2643_v44 = vld [vmem:[#allocation5 + $0x4d0] sm:$0xf0]  ;;  %v2518_v50 = vor.u32 %v3067_v39, %v2515_v42 }
  0x54   :  { %1396 = vmatpush.bf16.msrb.mxu1 %v2690_v10  ;;  %1422 = vmatpush.bf16.msrb.mxu3 %v2054_v15  ;;  %v3131_v48 = vld [vmem:[#allocation5 + $0x5c4] sm:$0xf]  ;;  %v2771_v49 = vld [vmem:[#allocation5 + $0x5d0] sm:$0xf0]  ;;  %v2646_v51 = vor.u32 %v3099_v43, %v2643_v44 }
  0x55   :  { %v3031_v52 = vld [vmem:[#allocation5 + $0x2a4] sm:$0xf]  ;;  %v2371_v53 = vld [vmem:[#allocation5 + $0x2b0] sm:$0xf0]  ;;  %v2774_v58 = vor.u32 %v3131_v48, %v2771_v49 }
  0x56   :  { %1434 = vmatpush.bf16.msra.mxu2 %v2198_v9  ;;  %v3063_v54 = vld [vmem:[#allocation5 + $0x3a4] sm:$0xf]  ;;  %v2499_v55 = vld [vmem:[#allocation5 + $0x3b0] sm:$0xf0]  ;;  %v2374_v59 = vor.u32 %v3031_v52, %v2371_v53 }
  0x57   :  { %1384 = vmatpush.bf16.msrb.mxu0 %v2546_v22  ;;  %v3095_v56 = vld [vmem:[#allocation5 + $0x4a4] sm:$0xf]  ;;  %v2627_v57 = vld [vmem:[#allocation5 + $0x4b0] sm:$0xf0]  ;;  %v2502_v62 = vor.u32 %v3063_v54, %v2499_v55 }
  0x58   :  { %1397 = vmatpush.bf16.msrb.mxu1 %v2674_v27  ;;  %1423 = vmatpush.bf16.msrb.mxu3 %v2038_v30  ;;  %v3127_v60 = vld [vmem:[#allocation5 + $0x5a4] sm:$0xf]  ;;  %v2755_v61 = vld [vmem:[#allocation5 + $0x5b0] sm:$0xf0]  ;;  %v2630_v63 = vor.u32 %v3095_v56, %v2627_v57 }
  0x59   :  { %v3027_v0 = vld [vmem:[#allocation5 + $0x284] sm:$0xf]  ;;  %v2355_v1 = vld [vmem:[#allocation5 + $0x290] sm:$0xf0]  ;;  %v2758_v9 = vor.u32 %v3127_v60, %v2755_v61  ;;  %v2153_v61 = vld [vmem:[#allocation5 + $0xe8] sm:$0xf] }
  0x5a   :  { %1435 = vmatpush.bf16.msra.mxu2 %v2182_v26  ;;  %1385 = vmatmul.bf16.vlgmr.msrb.gmra.mxu0 %v3388_v40  ;;  %v3059_v2 = vld [vmem:[#allocation5 + $0x384] sm:$0xf]  ;;  %v2483_v4 = vld [vmem:[#allocation5 + $0x390] sm:$0xf0]  ;;  %v2358_v10 = vor.u32 %v3027_v0, %v2355_v1 }
  0x5b   :  { %1442 = vmatpush.bf16.msra.mxu0 %v2406_v31  ;;  %1398 = vmatmul.bf16.vlgmr.msrb.gmra.mxu1 %v3390_v41  ;;  %v3091_v6 = vld [vmem:[#allocation5 + $0x484] sm:$0xf]  ;;  %v2611_v7 = vld [vmem:[#allocation5 + $0x490] sm:$0xf0]  ;;  %v2486_v14 = vor.u32 %v3059_v2, %v2483_v4 }
  0x5c   :  { %1455 = vmatpush.bf16.msra.mxu1 %v2534_v35  ;;  %1468 = vmatpush.bf16.msra.mxu3 %v2662_v36  ;;  %v3123_v12 = vld [vmem:[#allocation5 + $0x584] sm:$0xf]  ;;  %v2739_v13 = vld [vmem:[#allocation5 + $0x590] sm:$0xf0]  ;;  %v2614_v15 = vor.u32 %v3091_v6, %v2611_v7 }
  0x5d   :  { %1424 = vmatmul.bf16.vlgmr.msrb.gmra.mxu3 %v3374_v5  ;;  %v3023_v16 = vld [vmem:[#allocation5 + $0x264] sm:$0xf]  ;;  %v2339_v17 = vld [vmem:[#allocation5 + $0x270] sm:$0xf0]  ;;  %v2742_v23 = vor.u32 %v3123_v12, %v2739_v13 }
  0x5e   :  { %1436 = vmatpush.bf16.msra.mxu2 %v2166_v45  ;;  %v3055_v19 = vld [vmem:[#allocation5 + $0x364] sm:$0xf]  ;;  %v2467_v20 = vld [vmem:[#allocation5 + $0x370] sm:$0xf0]  ;;  %v2342_v24 = vor.u32 %v3023_v16, %v2339_v17  ;;  %v3042_v16 = vld [vmem:[#allocation5 + $0x2f4] sm:$0xf0] }
  0x5f   :  { %1443 = vmatpush.bf16.msra.mxu0 %v2390_v47  ;;  %v3087_v21 = vld [vmem:[#allocation5 + $0x464] sm:$0xf]  ;;  %v2595_v22 = vld [vmem:[#allocation5 + $0x470] sm:$0xf0]  ;;  %v2470_v27 = vor.u32 %v3055_v19, %v2467_v20  ;;  %v2537_v17 = vld [vmem:[#allocation5 + $0x3e8] sm:$0xf] }
  0x60   :  { %1456 = vmatpush.bf16.msra.mxu1 %v2518_v50  ;;  %1469 = vmatpush.bf16.msra.mxu3 %v2646_v51  ;;  %v3119_v25 = vld [vmem:[#allocation5 + $0x564] sm:$0xf]  ;;  %v2723_v26 = vld [vmem:[#allocation5 + $0x570] sm:$0xf0]  ;;  %v2598_v28 = vor.u32 %v3087_v21, %v2595_v22  ;;  %v3074_v19 = vld [vmem:[#allocation5 + $0x3f4] sm:$0xf0] }
  0x61   :  { %v3019_v29 = vld [vmem:[#allocation5 + $0x244] sm:$0xf]  ;;  %v2323_v30 = vld [vmem:[#allocation5 + $0x250] sm:$0xf0]  ;;  %1437 = vmatmul.bf16.vlgmr.msra.gmra.mxu2 %v3378_v11  ;;  %v2726_v35 = vor.u32 %v3119_v25, %v2723_v26  ;;  %v2137_v21 = vld [vmem:[#allocation5 + $0xc8] sm:$0xf]  ;;  %v2538_v26 = vor.u32 %v3074_v19, %v2537_v17 }
  0x62   :  { %1481 = vmatpush.bf16.msrb.mxu2 %v2790_v46  ;;  %v3051_v31 = vld [vmem:[#allocation5 + $0x344] sm:$0xf]  ;;  %v2451_v32 = vld [vmem:[#allocation5 + $0x350] sm:$0xf0]  ;;  %v2326_v36 = vor.u32 %v3019_v29, %v2323_v30  ;;  %v2974_v22 = vld [vmem:[#allocation5 + $0xd4] sm:$0xf0] }
  0x63   :  { %1444 = vmatpush.bf16.msra.mxu0 %v2374_v59  ;;  %v3083_v33 = vld [vmem:[#allocation5 + $0x444] sm:$0xf]  ;;  %v2579_v34 = vld [vmem:[#allocation5 + $0x450] sm:$0xf0]  ;;  %v2454_v39 = vor.u32 %v3051_v31, %v2451_v32  ;;  %v2265_v25 = vld [vmem:[#allocation5 + $0x1c8] sm:$0xf]  ;;  %v2138_v30 = vor.u32 %v2974_v22, %v2137_v21 }
  0x64   :  { %1457 = vmatpush.bf16.msra.mxu1 %v2502_v62  ;;  %1470 = vmatpush.bf16.msra.mxu3 %v2630_v63  ;;  %v3115_v37 = vld [vmem:[#allocation5 + $0x544] sm:$0xf]  ;;  %v2707_v38 = vld [vmem:[#allocation5 + $0x550] sm:$0xf0]  ;;  %v2582_v42 = vor.u32 %v3083_v33, %v2579_v34  ;;  %v2978_v62 = vld [vmem:[#allocation5 + $0xf4] sm:$0xf0] }
  0x65   :  { %v3015_v43 = vld [vmem:[#allocation5 + $0x224] sm:$0xf]  ;;  %v2307_v44 = vld [vmem:[#allocation5 + $0x230] sm:$0xf0]  ;;  %v2710_v49 = vor.u32 %v3115_v37, %v2707_v38  ;;  %v2154_v12 = vor.u32 %v2978_v62, %v2153_v61  ;;  %v3038_v29 = vld [vmem:[#allocation5 + $0x2d4] sm:$0xf0] }
  0x66   :  { %1482 = vmatpush.bf16.msrb.mxu2 %v2774_v58  ;;  %v3047_v45 = vld [vmem:[#allocation5 + $0x324] sm:$0xf]  ;;  %v2435_v46 = vld [vmem:[#allocation5 + $0x330] sm:$0xf0]  ;;  %v2310_v50 = vor.u32 %v3015_v43, %v2307_v44  ;;  %v2521_v31 = vld [vmem:[#allocation5 + $0x3c8] sm:$0xf] }
  0x67   :  { %1445 = vmatpush.bf16.msra.mxu0 %v2358_v10  ;;  %v3079_v47 = vld [vmem:[#allocation5 + $0x424] sm:$0xf]  ;;  %v2563_v48 = vld [vmem:[#allocation5 + $0x430] sm:$0xf0]  ;;  %v2438_v54 = vor.u32 %v3047_v45, %v2435_v46  ;;  %v2281_v10 = vld [vmem:[#allocation5 + $0x1e8] sm:$0xf] }
  0x68   :  { %1458 = vmatpush.bf16.msra.mxu1 %v2486_v14  ;;  %1471 = vmatpush.bf16.msra.mxu3 %v2614_v15  ;;  %v3111_v51 = vld [vmem:[#allocation5 + $0x524] sm:$0xf]  ;;  %v2691_v52 = vld [vmem:[#allocation5 + $0x530] sm:$0xf0]  ;;  %v2566_v55 = vor.u32 %v3079_v47, %v2563_v48  ;;  %v3010_v14 = vld [vmem:[#allocation5 + $0x1f4] sm:$0xf0] }
  0x69   :  { %v3011_v53 = vld [vmem:[#allocation5 + $0x204] sm:$0xf]  ;;  %v2291_v56 = vld [vmem:[#allocation5 + $0x210] sm:$0xf0]  ;;  %v2694_v1 = vor.u32 %v3111_v51, %v2691_v52  ;;  %v2409_v15 = vld [vmem:[#allocation5 + $0x2e8] sm:$0xf] }
  0x6a   :  { %1483 = vmatpush.bf16.msrb.mxu2 %v2758_v9  ;;  %v3043_v57 = vld [vmem:[#allocation5 + $0x304] sm:$0xf]  ;;  %v2419_v58 = vld [vmem:[#allocation5 + $0x310] sm:$0xf0]  ;;  %v2294_v2 = vor.u32 %v3011_v53, %v2291_v56  ;;  %v3070_v32 = vld [vmem:[#allocation5 + $0x3d4] sm:$0xf0] }
  0x6b   :  { %1446 = vmatpush.bf16.msra.mxu0 %v2342_v24  ;;  %v3075_v59 = vld [vmem:[#allocation5 + $0x404] sm:$0xf]  ;;  %v2547_v60 = vld [vmem:[#allocation5 + $0x410] sm:$0xf0]  ;;  %v2422_v4 = vor.u32 %v3043_v57, %v2419_v58  ;;  %v2410_v24 = vor.u32 %v3042_v16, %v2409_v15  ;;  %v2121_v33 = vld [vmem:[#allocation5 + $0xa8] sm:$0xf]  ;;  %v2522_v38 = vor.u32 %v3070_v32, %v2521_v31 }
  0x6c   :  { %1459 = vmatpush.bf16.msra.mxu1 %v2470_v27  ;;  %1472 = vmatpush.bf16.msra.mxu3 %v2598_v28  ;;  %v3139_v63 = vld [vmem:[#allocation5 + $0x604] sm:$0xf]  ;;  %v2803_v0 = vld [vmem:[#allocation5 + $0x610] sm:$0xf0]  ;;  %v2550_v6 = vor.u32 %v3075_v59, %v2547_v60  ;;  %v3006_v27 = vld [vmem:[#allocation5 + $0x1d4] sm:$0xf0] }
  0x6d   :  { %v3107_v7 = vld [vmem:[#allocation5 + $0x504] sm:$0xf]  ;;  %v2675_v9 = vld [vmem:[#allocation5 + $0x510] sm:$0xf0]  ;;  %v2806_v13 = vor.u32 %v3139_v63, %v2803_v0  ;;  %v2393_v28 = vld [vmem:[#allocation5 + $0x2c8] sm:$0xf] }
  0x6e   :  { %1484 = vmatpush.bf16.msrb.mxu2 %v2742_v23  ;;  %v2678_v20 = vor.u32 %v3107_v7, %v2675_v9  ;;  %v2282_v23 = vor.u32 %v3010_v14, %v2281_v10  ;;  %v2970_v34 = vld [vmem:[#allocation5 + $0xb4] sm:$0xf0]  ;;  %v2249_v37 = vld [vmem:[#allocation5 + $0x1a8] sm:$0xf] }
  0x6f   :  { %1447 = vmatpush.bf16.msra.mxu0 %v2326_v36  ;;  %v2394_v36 = vor.u32 %v3038_v29, %v2393_v28  ;;  %v3034_v43 = vld [vmem:[#allocation5 + $0x2b4] sm:$0xf0]  ;;  %v2122_v44 = vor.u32 %v2970_v34, %v2121_v33  ;;  %v2505_v45 = vld [vmem:[#allocation5 + $0x3a8] sm:$0xf] }
  0x70   :  { %1460 = vmatpush.bf16.msra.mxu1 %v2454_v39  ;;  %1473 = vmatpush.bf16.msra.mxu3 %v2582_v42  ;;  %v3002_v39 = vld [vmem:[#allocation5 + $0x1b4] sm:$0xf0]  ;;  %v2377_v42 = vld [vmem:[#allocation5 + $0x2a8] sm:$0xf] }
  0x71   :  { %v3066_v46 = vld [vmem:[#allocation5 + $0x3b4] sm:$0xf0]  ;;  %v2105_v47 = vld [vmem:[#allocation5 + $0x88] sm:$0xf] }
  0x72   :  { %1485 = vmatpush.bf16.msrb.mxu2 %v2726_v35  ;;  %v2266_v35 = vor.u32 %v3006_v27, %v2265_v25  ;;  %v2966_v48 = vld [vmem:[#allocation5 + $0x94] sm:$0xf0]  ;;  %v2233_v51 = vld [vmem:[#allocation5 + $0x188] sm:$0xf]  ;;  %v2506_v52 = vor.u32 %v3066_v46, %v2505_v45 }
  0x73   :  { %1448 = vmatpush.bf16.msra.mxu0 %v2310_v50  ;;  %v2378_v50 = vor.u32 %v3034_v43, %v2377_v42  ;;  %v2998_v53 = vld [vmem:[#allocation5 + $0x194] sm:$0xf0]  ;;  %v2106_v56 = vor.u32 %v2966_v48, %v2105_v47  ;;  %v2489_v57 = vld [vmem:[#allocation5 + $0x388] sm:$0xf] }
  0x74   :  { %1461 = vmatpush.bf16.msra.mxu1 %v2438_v54  ;;  %1474 = vmatpush.bf16.msra.mxu3 %v2566_v55  ;;  %v2361_v54 = vld [vmem:[#allocation5 + $0x288] sm:$0xf]  ;;  %v3030_v55 = vld [vmem:[#allocation5 + $0x294] sm:$0xf0]  ;;  %v2234_v61 = vor.u32 %v2998_v53, %v2233_v51 }
  0x75   :  { %v3062_v58 = vld [vmem:[#allocation5 + $0x394] sm:$0xf0]  ;;  %v2089_v59 = vld [vmem:[#allocation5 + $0x68] sm:$0xf]  ;;  %v2362_v62 = vor.u32 %v3030_v55, %v2361_v54  ;;  %v2976_v54 = vld [vmem:[#allocation5 + $0xec] sm:$0xf] }
  0x76   :  { %1486 = vmatpush.bf16.msrb.mxu2 %v2710_v49  ;;  %v2250_v49 = vor.u32 %v3002_v39, %v2249_v37  ;;  %v2962_v60 = vld [vmem:[#allocation5 + $0x74] sm:$0xf0]  ;;  %v2217_v63 = vld [vmem:[#allocation5 + $0x168] sm:$0xf]  ;;  %v2490_v0 = vor.u32 %v3062_v58, %v2489_v57 }
  0x77   :  { %1449 = vmatpush.bf16.msra.mxu0 %v2294_v2  ;;  %v2345_v2 = vld [vmem:[#allocation5 + $0x268] sm:$0xf]  ;;  %v3058_v9 = vld [vmem:[#allocation5 + $0x374] sm:$0xf0] }
  0x78   :  { %1462 = vmatpush.bf16.msra.mxu1 %v2422_v4  ;;  %1475 = vmatpush.bf16.msra.mxu3 %v2550_v6  ;;  %v3026_v4 = vld [vmem:[#allocation5 + $0x274] sm:$0xf0]  ;;  %v2090_v6 = vor.u32 %v2962_v60, %v2089_v59  ;;  %v2473_v7 = vld [vmem:[#allocation5 + $0x368] sm:$0xf] }
  0x79   :  { %v2073_v10 = vld [vmem:[#allocation5 + $0x48] sm:$0xf]  ;;  %v2346_v14 = vor.u32 %v3026_v4, %v2345_v2  ;;  %v2990_v16 = vld [vmem:[#allocation5 + $0x154] sm:$0xf0]  ;;  %v2474_v17 = vor.u32 %v3058_v9, %v2473_v7 }
  0x7a   :  { %1487 = vmatpush.bf16.msrb.mxu2 %v2694_v1  ;;  %1450 = vmatmul.bf16.vlgmr.msra.gmra.mxu0 %v3372_v3  ;;  %v2994_v1 = vld [vmem:[#allocation5 + $0x174] sm:$0xf0]  ;;  %v2201_v15 = vld [vmem:[#allocation5 + $0x148] sm:$0xf] }
  0x7b   :  { %1476 = vmatmul.bf16.vlgmr.msra.gmra.mxu3 %v3388_v40  ;;  %1533 = vmatpush.bf16.msrb.mxu0 %v2410_v24  ;;  %v2329_v19 = vld [vmem:[#allocation5 + $0x248] sm:$0xf]  ;;  %v2954_v25 = vld [vmem:[#allocation5 + $0x34] sm:$0xf0] }
  0x7c   :  { %1507 = vmatpush.bf16.msrb.mxu1 %v2154_v12  ;;  %1501 = vmatpush.bf16.msrb.mxu3 %v2806_v13  ;;  %v2958_v12 = vld [vmem:[#allocation5 + $0x54] sm:$0xf0]  ;;  %v2218_v13 = vor.u32 %v2994_v1, %v2217_v63  ;;  %v2457_v22 = vld [vmem:[#allocation5 + $0x348] sm:$0xf]  ;;  %v3008_v1 = vld [vmem:[#allocation5 + $0x1ec] sm:$0xf] }
  0x7d   :  { %1463 = vmatmul.bf16.vlgmr.msra.gmra.mxu1 %v3376_v8  ;;  %v2074_v21 = vor.u32 %v2958_v12, %v2073_v10  ;;  %v2057_v24 = vld [vmem:[#allocation5 + $0x28] sm:$0xf]  ;;  %v3018_v32 = vld [vmem:[#allocation5 + $0x234] sm:$0xf0]  ;;  %v2972_v12 = vld [vmem:[#allocation5 + $0xcc] sm:$0xf] }
  0x7e   :  { %1488 = vmatpush.bf16.msrb.mxu2 %v2678_v20  ;;  %v3022_v20 = vld [vmem:[#allocation5 + $0x254] sm:$0xf0]  ;;  %v2185_v28 = vld [vmem:[#allocation5 + $0x128] sm:$0xf]  ;;  %v2058_v33 = vor.u32 %v2954_v25, %v2057_v24  ;;  %v2968_v25 = vld [vmem:[#allocation5 + $0xac] sm:$0xf] }
  0x7f   :  { %1534 = vmatpush.bf16.msrb.mxu0 %v2394_v36  ;;  %v2330_v27 = vor.u32 %v3022_v20, %v2329_v19  ;;  %v2313_v31 = vld [vmem:[#allocation5 + $0x228] sm:$0xf]  ;;  %v2950_v37 = vld [vmem:[#allocation5 + $0x14] sm:$0xf0]  ;;  %v3004_v19 = vld [vmem:[#allocation5 + $0x1cc] sm:$0xf] }
  0x80   :  { %1520 = vmatpush.bf16.msra.mxu3 %v2282_v23  ;;  %1508 = vmatpush.bf16.msrb.mxu1 %v2138_v30  ;;  %v3054_v23 = vld [vmem:[#allocation5 + $0x354] sm:$0xf0]  ;;  %v2441_v34 = vld [vmem:[#allocation5 + $0x328] sm:$0xf]  ;;  %v2314_v43 = vor.u32 %v3018_v32, %v2313_v31  ;;  %v3000_v31 = vld [vmem:[#allocation5 + $0x1ac] sm:$0xf] }
  0x81   :  { %1489 = vmatmul.bf16.vlgmr.msrb.gmra.mxu2 %v3390_v41  ;;  %v2458_v29 = vor.u32 %v3054_v23, %v2457_v22  ;;  %v2986_v30 = vld [vmem:[#allocation5 + $0x134] sm:$0xf0]  ;;  %v2041_v36 = vld [vmem:[#allocation5 + $0x8] sm:$0xf] }
  0x82   :  { %1546 = vmatpush.bf16.msra.mxu2 %v2538_v26  ;;  %v2202_v26 = vor.u32 %v2990_v16, %v2201_v15  ;;  %v3106_v39 = vld [vmem:[#allocation5 + $0x4f4] sm:$0xf0]  ;;  %v2186_v42 = vor.u32 %v2986_v30, %v2185_v28  ;;  %v2297_v46 = vld [vmem:[#allocation5 + $0x208] sm:$0xf]  ;;  %v2042_v51 = vor.u32 %v2950_v37, %v2041_v36  ;;  %v2964_v37 = vld [vmem:[#allocation5 + $0x8c] sm:$0xf] }
  0x83   :  { %1535 = vmatpush.bf16.msrb.mxu0 %v2378_v50  ;;  %v2982_v45 = vld [vmem:[#allocation5 + $0x114] sm:$0xf0]  ;;  %v2809_v57 = vld [vmem:[#allocation5 + $0x608] sm:$0xf] }
  0x84   :  { %1521 = vmatpush.bf16.msra.mxu3 %v2266_v35  ;;  %1509 = vmatpush.bf16.msrb.mxu1 %v2122_v44  ;;  %v3050_v35 = vld [vmem:[#allocation5 + $0x334] sm:$0xf0]  ;;  %v2169_v44 = vld [vmem:[#allocation5 + $0x108] sm:$0xf] }
  0x85   :  { %v2442_v47 = vor.u32 %v3050_v35, %v2441_v34  ;;  %v3014_v48 = vld [vmem:[#allocation5 + $0x214] sm:$0xf0]  ;;  %v2170_v59 = vor.u32 %v2982_v45, %v2169_v44  ;;  %v2777_v7 = vld [vmem:[#allocation5 + $0x5c8] sm:$0xf]  ;;  %v2996_v45 = vld [vmem:[#allocation5 + $0x18c] sm:$0xf] }
  0x86   :  { %1547 = vmatpush.bf16.msra.mxu2 %v2522_v38  ;;  %v2665_v38 = vld [vmem:[#allocation5 + $0x4e8] sm:$0xf]  ;;  %v3046_v50 = vld [vmem:[#allocation5 + $0x314] sm:$0xf0]  ;;  %v2298_v60 = vor.u32 %v3014_v48, %v2297_v46 }
  0x87   :  { %1536 = vmatpush.bf16.msrb.mxu0 %v2362_v62  ;;  %v3138_v53 = vld [vmem:[#allocation5 + $0x5f4] sm:$0xf0]  ;;  %v2666_v55 = vor.u32 %v3106_v39, %v2665_v38  ;;  %v2761_v22 = vld [vmem:[#allocation5 + $0x5a8] sm:$0xf]  ;;  %v2107_v38 = vld [vmem:[#allocation5 + $0x98] sm:$0xf0] }
  0x88   :  { %1522 = vmatpush.bf16.msra.mxu3 %v2250_v49  ;;  %1510 = vmatpush.bf16.msrb.mxu1 %v2106_v56  ;;  %v2425_v49 = vld [vmem:[#allocation5 + $0x308] sm:$0xf]  ;;  %v2155_v56 = vld [vmem:[#allocation5 + $0xf8] sm:$0xf0]  ;;  %v3142_v58 = vld [vmem:[#allocation5 + $0x614] sm:$0xf0]  ;;  %v2110_v46 = vor.u32 %v2964_v37, %v2107_v38 }
  0x89   :  { %v3102_v62 = vld [vmem:[#allocation5 + $0x4d4] sm:$0xf0]  ;;  %v2426_v63 = vor.u32 %v3046_v50, %v2425_v49  ;;  %v2158_v2 = vor.u32 %v2976_v54, %v2155_v56  ;;  %v2810_v4 = vor.u32 %v3142_v58, %v2809_v57  ;;  %v2745_v34 = vld [vmem:[#allocation5 + $0x588] sm:$0xf]  ;;  %v2992_v57 = vld [vmem:[#allocation5 + $0x16c] sm:$0xf] }
  0x8a   :  { %1548 = vmatpush.bf16.msra.mxu2 %v2506_v52  ;;  %v2793_v52 = vld [vmem:[#allocation5 + $0x5e8] sm:$0xf]  ;;  %v3134_v9 = vld [vmem:[#allocation5 + $0x5d4] sm:$0xf0] }
  0x8b   :  { %2816 = vmatmul.msk.bf16.vlgmr.msrb.gmra.mxu3 %vm1321_vm0, %v3384_v18  ;;  %1537 = vmatpush.bf16.msrb.mxu0 %v2346_v14  ;;  %v2633_v14 = vld [vmem:[#allocation5 + $0x4a8] sm:$0xf]  ;;  %v3098_v15 = vld [vmem:[#allocation5 + $0x4b4] sm:$0xf0] }
  0x8c   :  { %1523 = vmatpush.bf16.msra.mxu3 %v2234_v61  ;;  %1511 = vmatpush.bf16.msrb.mxu1 %v2090_v6  ;;  %v2649_v61 = vld [vmem:[#allocation5 + $0x4c8] sm:$0xf]  ;;  %v2283_v6 = vld [vmem:[#allocation5 + $0x1f8] sm:$0xf0]  ;;  %v3130_v23 = vld [vmem:[#allocation5 + $0x5b4] sm:$0xf0]  ;;  %v2634_v24 = vor.u32 %v3098_v15, %v2633_v14 }
  0x8d   :  { %v2650_v10 = vor.u32 %v3102_v62, %v2649_v61  ;;  %v2286_v16 = vor.u32 %v3008_v1, %v2283_v6  ;;  %v3094_v28 = vld [vmem:[#allocation5 + $0x494] sm:$0xf0]  ;;  %v2762_v30 = vor.u32 %v3130_v23, %v2761_v22  ;;  %v2601_v39 = vld [vmem:[#allocation5 + $0x468] sm:$0xf]  ;;  %v2952_v15 = vld [vmem:[#allocation5 + $0x2c] sm:$0xf] }
  0x8e   :  { %1549 = vmatpush.bf16.msra.mxu2 %v2490_v0  ;;  %v2794_v0 = vor.u32 %v3138_v53, %v2793_v52  ;;  %v3126_v35 = vld [vmem:[#allocation5 + $0x594] sm:$0xf0]  ;;  %v2729_v48 = vld [vmem:[#allocation5 + $0x568] sm:$0xf]  ;;  %v2091_v52 = vld [vmem:[#allocation5 + $0x78] sm:$0xf0] }
  0x8f   :  { %1538 = vmatpush.bf16.msrb.mxu0 %v2330_v27  ;;  %v2617_v27 = vld [vmem:[#allocation5 + $0x488] sm:$0xf]  ;;  %v2746_v44 = vor.u32 %v3126_v35, %v2745_v34  ;;  %v3122_v49 = vld [vmem:[#allocation5 + $0x574] sm:$0xf0]  ;;  %v3040_v22 = vld [vmem:[#allocation5 + $0x2ec] sm:$0xf] }
  0x90   :  { %1524 = vmatpush.bf16.msra.mxu3 %v2218_v13  ;;  %1512 = vmatpush.bf16.msrb.mxu1 %v2074_v21  ;;  %v2139_v13 = vld [vmem:[#allocation5 + $0xd8] sm:$0xf0]  ;;  %v2618_v36 = vor.u32 %v3094_v28, %v2617_v27  ;;  %v2585_v53 = vld [vmem:[#allocation5 + $0x448] sm:$0xf]  ;;  %v3086_v54 = vld [vmem:[#allocation5 + $0x454] sm:$0xf0]  ;;  %v2730_v56 = vor.u32 %v3122_v49, %v2729_v48 }
  0x91   :  { %v2142_v20 = vor.u32 %v2972_v12, %v2139_v13  ;;  %v2267_v21 = vld [vmem:[#allocation5 + $0x1d8] sm:$0xf0]  ;;  %v3118_v61 = vld [vmem:[#allocation5 + $0x554] sm:$0xf0]  ;;  %v2586_v62 = vor.u32 %v3086_v54, %v2585_v53  ;;  %v2569_v1 = vld [vmem:[#allocation5 + $0x428] sm:$0xf] }
  0x92   :  { %1550 = vmatpush.bf16.msra.mxu2 %v2474_v17  ;;  %v2778_v17 = vor.u32 %v3134_v9, %v2777_v7  ;;  %v2988_v7 = vld [vmem:[#allocation5 + $0x14c] sm:$0xf]  ;;  %v2697_v12 = vld [vmem:[#allocation5 + $0x528] sm:$0xf]  ;;  %v3114_v13 = vld [vmem:[#allocation5 + $0x534] sm:$0xf0] }
  0x93   :  { %1539 = vmatpush.bf16.msrb.mxu0 %v2314_v43  ;;  %v2411_v23 = vld [vmem:[#allocation5 + $0x2f8] sm:$0xf0]  ;;  %v2681_v27 = vld [vmem:[#allocation5 + $0x508] sm:$0xf]  ;;  %v3110_v28 = vld [vmem:[#allocation5 + $0x514] sm:$0xf0] }
  0x94   :  { %1525 = vmatpush.bf16.msra.mxu3 %v2202_v26  ;;  %1513 = vmatpush.bf16.msrb.mxu1 %v2058_v33  ;;  %v2123_v26 = vld [vmem:[#allocation5 + $0xb8] sm:$0xf0]  ;;  %v3104_v35 = vld [vmem:[#allocation5 + $0x4ec] sm:$0xf]  ;;  %v2682_v38 = vor.u32 %v3110_v28, %v2681_v27 }
  0x95   :  { %v2126_v32 = vor.u32 %v2968_v25, %v2123_v26  ;;  %v2251_v33 = vld [vmem:[#allocation5 + $0x1b8] sm:$0xf0]  ;;  %v3136_v48 = vld [vmem:[#allocation5 + $0x5ec] sm:$0xf] }
  0x96   :  { %1551 = vmatpush.bf16.msra.mxu2 %v2458_v29  ;;  %v2270_v29 = vor.u32 %v3004_v19, %v2267_v21  ;;  %v2254_v43 = vor.u32 %v3000_v31, %v2251_v33  ;;  %v3078_v19 = vld [vmem:[#allocation5 + $0x414] sm:$0xf0]  ;;  %v2698_v21 = vor.u32 %v3114_v13, %v2697_v12  ;;  %v2187_v26 = vld [vmem:[#allocation5 + $0x138] sm:$0xf0]  ;;  %v2414_v33 = vor.u32 %v3040_v22, %v2411_v23  ;;  %v3100_v53 = vld [vmem:[#allocation5 + $0x4cc] sm:$0xf] }
  0x97   :  { %1540 = vmatpush.bf16.msrb.mxu0 %v2298_v60  ;;  %v2713_v60 = vld [vmem:[#allocation5 + $0x548] sm:$0xf]  ;;  %v2043_v31 = vld [vmem:[#allocation5 + $0x18] sm:$0xf0]  ;;  %v3128_v13 = vld [vmem:[#allocation5 + $0x5ac] sm:$0xf] }
  0x98   :  { %1526 = vmatpush.bf16.msra.mxu3 %v2186_v42  ;;  %1514 = vmatpush.bf16.msrb.mxu1 %v2042_v51  ;;  %v3090_v42 = vld [vmem:[#allocation5 + $0x474] sm:$0xf0]  ;;  %v2960_v51 = vld [vmem:[#allocation5 + $0x6c] sm:$0xf]  ;;  %v2714_v6 = vor.u32 %v3118_v61, %v2713_v60  ;;  %v2539_v34 = vld [vmem:[#allocation5 + $0x3f8] sm:$0xf0] }
  0x99   :  { %v2602_v50 = vor.u32 %v3090_v42, %v2601_v39  ;;  %v2094_v58 = vor.u32 %v2960_v51, %v2091_v52  ;;  %v3036_v39 = vld [vmem:[#allocation5 + $0x2cc] sm:$0xf]  ;;  %v2395_v42 = vld [vmem:[#allocation5 + $0x2d8] sm:$0xf0] }
  0x9a   :  { %1552 = vmatpush.bf16.msra.mxu2 %v2442_v47  ;;  %1541 = vmatmul.bf16.vlgmr.msrb.gmra.mxu0 %v3372_v3  ;;  %v2235_v47 = vld [vmem:[#allocation5 + $0x198] sm:$0xf0]  ;;  %v2398_v51 = vor.u32 %v3036_v39, %v2395_v42  ;;  %v3132_v61 = vld [vmem:[#allocation5 + $0x5cc] sm:$0xf] }
  0x9b   :  { %1592 = vmatpush.bf16.msra.mxu0 %v2810_v4  ;;  %1515 = vmatmul.bf16.vlgmr.msrb.gmra.mxu1 %v3374_v5  ;;  %v2795_v49 = vld [vmem:[#allocation5 + $0x5f8] sm:$0xf0]  ;;  %v3056_v27 = vld [vmem:[#allocation5 + $0x36c] sm:$0xf] }
  0x9c   :  { %1559 = vmatpush.bf16.msra.mxu1 %v2666_v55  ;;  %1527 = vmatpush.bf16.msra.mxu3 %v2170_v59  ;;  %v2238_v55 = vor.u32 %v2996_v45, %v2235_v47  ;;  %v2219_v59 = vld [vmem:[#allocation5 + $0x178] sm:$0xf0]  ;;  %v3052_v42 = vld [vmem:[#allocation5 + $0x34c] sm:$0xf] }
  0x9d   :  { %v2222_v4 = vor.u32 %v2992_v57, %v2219_v59  ;;  %v2171_v45 = vld [vmem:[#allocation5 + $0x118] sm:$0xf0] }
  0x9e   :  { %1553 = vmatpush.bf16.msra.mxu2 %v2426_v63  ;;  %v2956_v63 = vld [vmem:[#allocation5 + $0x4c] sm:$0xf]  ;;  %v2523_v52 = vld [vmem:[#allocation5 + $0x3d8] sm:$0xf0] }
  0x9f   :  { %1528 = vmatmul.bf16.vlgmr.msra.gmra.mxu3 %v3378_v11  ;;  %1611 = vmatpush.bf16.msrb.mxu0 %v2286_v16  ;;  %v2059_v16 = vld [vmem:[#allocation5 + $0x38] sm:$0xf0] }
  0xa0   :  { %1572 = vmatpush.bf16.msrb.mxu3 %v2794_v0  ;;  %1560 = vmatpush.bf16.msra.mxu1 %v2650_v10  ;;  %v2075_v0 = vld [vmem:[#allocation5 + $0x58] sm:$0xf0]  ;;  %v2062_v25 = vor.u32 %v2952_v15, %v2059_v16  ;;  %v3060_v15 = vld [vmem:[#allocation5 + $0x38c] sm:$0xf] }
  0xa1   :  { %1554 = vmatmul.bf16.vlgmr.msra.gmra.mxu2 %v3376_v8  ;;  %v2078_v9 = vor.u32 %v2956_v63, %v2075_v0  ;;  %v2203_v10 = vld [vmem:[#allocation5 + $0x158] sm:$0xf0]  ;;  %v3064_v63 = vld [vmem:[#allocation5 + $0x3ac] sm:$0xf] }
  0xa2   :  { %1598 = vmatpush.bf16.msrb.mxu2 %v2158_v2  ;;  %v3082_v2 = vld [vmem:[#allocation5 + $0x434] sm:$0xf0]  ;;  %v2651_v54 = vld [vmem:[#allocation5 + $0x4d8] sm:$0xf0] }
  0xa3   :  { %1612 = vmatpush.bf16.msrb.mxu0 %v2270_v29  ;;  %v2570_v14 = vor.u32 %v3082_v2, %v2569_v1  ;;  %v2379_v57 = vld [vmem:[#allocation5 + $0x2b8] sm:$0xf0]  ;;  %v2654_v60 = vor.u32 %v3100_v53, %v2651_v54  ;;  %v3096_v2 = vld [vmem:[#allocation5 + $0x4ac] sm:$0xf] }
  0xa4   :  { %1573 = vmatpush.bf16.msrb.mxu3 %v2778_v17  ;;  %1561 = vmatpush.bf16.msra.mxu1 %v2634_v24  ;;  %v2553_v17 = vld [vmem:[#allocation5 + $0x408] sm:$0xf]  ;;  %v2984_v24 = vld [vmem:[#allocation5 + $0x12c] sm:$0xf]  ;;  %v2507_v1 = vld [vmem:[#allocation5 + $0x3b8] sm:$0xf0] }
  0xa5   :  { %v2554_v29 = vor.u32 %v3078_v19, %v2553_v17  ;;  %v2190_v37 = vor.u32 %v2984_v24, %v2187_v26  ;;  %v2491_v17 = vld [vmem:[#allocation5 + $0x398] sm:$0xf0]  ;;  %v3092_v19 = vld [vmem:[#allocation5 + $0x48c] sm:$0xf] }
  0xa6   :  { %1599 = vmatpush.bf16.msrb.mxu2 %v2142_v20  ;;  %v2206_v20 = vor.u32 %v2988_v7, %v2203_v10  ;;  %v2363_v7 = vld [vmem:[#allocation5 + $0x298] sm:$0xf0]  ;;  %v2510_v10 = vor.u32 %v3064_v63, %v2507_v1  ;;  %v2494_v23 = vor.u32 %v3060_v15, %v2491_v17  ;;  %v3116_v54 = vld [vmem:[#allocation5 + $0x54c] sm:$0xf] }
  0xa7   :  { %1613 = vmatpush.bf16.msrb.mxu0 %v2254_v43  ;;  %v2347_v22 = vld [vmem:[#allocation5 + $0x278] sm:$0xf0]  ;;  %v3044_v15 = vld [vmem:[#allocation5 + $0x30c] sm:$0xf] }
  0xa8   :  { %1574 = vmatpush.bf16.msrb.mxu3 %v2762_v30  ;;  %1562 = vmatpush.bf16.msra.mxu1 %v2618_v36  ;;  %v2948_v30 = vld [vmem:[#allocation5 + $0xc] sm:$0xf]  ;;  %v2667_v36 = vld [vmem:[#allocation5 + $0x4f8] sm:$0xf0] }
  0xa9   :  { %v2046_v43 = vor.u32 %v2948_v30, %v2043_v31  ;;  %v2670_v47 = vor.u32 %v3104_v35, %v2667_v36  ;;  %v2747_v26 = vld [vmem:[#allocation5 + $0x598] sm:$0xf0]  ;;  %v3088_v31 = vld [vmem:[#allocation5 + $0x46c] sm:$0xf] }
  0xaa   :  { %1600 = vmatpush.bf16.msrb.mxu2 %v2126_v32  ;;  %2817 = vmatmul.msk.bf16.vlgmr.msra.gmra.mxu0 %vm1321_vm0, %v3384_v18  ;;  %v3072_v32 = vld [vmem:[#allocation5 + $0x3ec] sm:$0xf]  ;;  %v2475_v30 = vld [vmem:[#allocation5 + $0x378] sm:$0xf0] }
  0xab   :  { %1614 = vmatpush.bf16.msrb.mxu0 %v2238_v55  ;;  %v2478_v36 = vor.u32 %v3056_v27, %v2475_v30  ;;  %v2731_v39 = vld [vmem:[#allocation5 + $0x578] sm:$0xf0]  ;;  %v3076_v17 = vld [vmem:[#allocation5 + $0x40c] sm:$0xf] }
  0xac   :  { %1575 = vmatpush.bf16.msrb.mxu3 %v2746_v44  ;;  %1563 = vmatpush.bf16.msra.mxu1 %v2602_v50  ;;  %v2980_v44 = vld [vmem:[#allocation5 + $0x10c] sm:$0xf]  ;;  %v2299_v63 = vld [vmem:[#allocation5 + $0x218] sm:$0xf0] }
  0xad   :  { %v3068_v50 = vld [vmem:[#allocation5 + $0x3cc] sm:$0xf]  ;;  %v2174_v55 = vor.u32 %v2980_v44, %v2171_v45  ;;  %v2459_v45 = vld [vmem:[#allocation5 + $0x358] sm:$0xf0] }
  0xae   :  { %1601 = vmatpush.bf16.msrb.mxu2 %v2110_v46  ;;  %v2542_v46 = vor.u32 %v3072_v32, %v2539_v34  ;;  %v2526_v59 = vor.u32 %v3068_v50, %v2523_v52  ;;  %v2603_v32 = vld [vmem:[#allocation5 + $0x478] sm:$0xf0]  ;;  %v2462_v52 = vor.u32 %v3052_v42, %v2459_v45 }
  0xaf   :  { %1615 = vmatpush.bf16.msrb.mxu0 %v2222_v4  ;;  %v2635_v4 = vld [vmem:[#allocation5 + $0x4b8] sm:$0xf0] }
  0xb0   :  { %1576 = vmatpush.bf16.msrb.mxu3 %v2730_v56  ;;  %1564 = vmatpush.bf16.msra.mxu1 %v2586_v62  ;;  %v3032_v56 = vld [vmem:[#allocation5 + $0x2ac] sm:$0xf]  ;;  %v2779_v62 = vld [vmem:[#allocation5 + $0x5d8] sm:$0xf0]  ;;  %v2638_v12 = vor.u32 %v3096_v2, %v2635_v4 }
  0xb1   :  { %v2382_v0 = vor.u32 %v3032_v56, %v2379_v57  ;;  %v2331_v34 = vld [vmem:[#allocation5 + $0x258] sm:$0xf0]  ;;  %v3048_v56 = vld [vmem:[#allocation5 + $0x32c] sm:$0xf] }
  0xb2   :  { %1602 = vmatpush.bf16.msrb.mxu2 %v2094_v58  ;;  %v2798_v58 = vor.u32 %v3136_v48, %v2795_v49  ;;  %v3016_v48 = vld [vmem:[#allocation5 + $0x22c] sm:$0xf]  ;;  %v2315_v49 = vld [vmem:[#allocation5 + $0x238] sm:$0xf0] }
  0xb3   :  { %1616 = vmatpush.bf16.msrb.mxu0 %v2206_v20  ;;  %v2619_v20 = vld [vmem:[#allocation5 + $0x498] sm:$0xf0]  ;;  %v2318_v57 = vor.u32 %v3016_v48, %v2315_v49  ;;  %v3140_v2 = vld [vmem:[#allocation5 + $0x60c] sm:$0xf] }
  0xb4   :  { %1577 = vmatpush.bf16.msrb.mxu3 %v2714_v6  ;;  %1565 = vmatpush.bf16.msra.mxu1 %v2570_v14  ;;  %v3028_v6 = vld [vmem:[#allocation5 + $0x28c] sm:$0xf]  ;;  %v2763_v14 = vld [vmem:[#allocation5 + $0x5b8] sm:$0xf0]  ;;  %v2622_v24 = vor.u32 %v3092_v19, %v2619_v20 }
  0xb5   :  { %v2366_v16 = vor.u32 %v3028_v6, %v2363_v7  ;;  %v2811_v4 = vld [vmem:[#allocation5 + $0x618] sm:$0xf0]  ;;  %v3144_v49 = vld [vmem:[#allocation8 + $0x8] sm:$0xff] }
  0xb6   :  { %1603 = vmatpush.bf16.msrb.mxu2 %v2078_v9  ;;  %v2782_v9 = vor.u32 %v3132_v61, %v2779_v62  ;;  %v3012_v62 = vld [vmem:[#allocation5 + $0x20c] sm:$0xf]  ;;  %v2555_v19 = vld [vmem:[#allocation5 + $0x418] sm:$0xf0]  ;;  %v2814_v20 = vor.u32 %v3140_v2, %v2811_v4 }
  0xb7   :  { %1617 = vmatpush.bf16.msrb.mxu0 %v2190_v37  ;;  %v2606_v37 = vor.u32 %v3088_v31, %v2603_v32  ;;  %v3150_v27 = vld [vmem:[#allocation8 + $0x38] sm:$0xff]  ;;  %v3149_v32 = vld [vmem:[#allocation8 + $0x30] sm:$0xff] }
  0xb8   :  { %1578 = vmatpush.bf16.msrb.mxu3 %v2698_v21  ;;  %1566 = vmatpush.bf16.msra.mxu1 %v2554_v29  ;;  %v3024_v21 = vld [vmem:[#allocation5 + $0x26c] sm:$0xf]  ;;  %v3158_v31 = vld [vmem:[#allocation8 + $0x78] sm:$0xff] }
  0xb9   :  { %v2350_v28 = vor.u32 %v3024_v21, %v2347_v22  ;;  %v3154_v48 = vld [vmem:[#allocation8 + $0x58] sm:$0xff] }
  0xba   :  { %1604 = vmatpush.bf16.msrb.mxu2 %v2062_v25  ;;  %v3124_v25 = vld [vmem:[#allocation5 + $0x58c] sm:$0xf] }
  0xbb   :  { %1567 = vmatmul.bf16.vlgmr.msra.gmra.mxu1 %v3388_v40  ;;  %1618 = vmatpush.bf16.msrb.mxu0 %v2174_v55  ;;  %v2750_v35 = vor.u32 %v3124_v25, %v2747_v26  ;;  %v2715_v55 = vld [vmem:[#allocation5 + $0x558] sm:$0xf0]  ;;  %v2558_v26 = vor.u32 %v3076_v17, %v2555_v19  ;;  %v3163_v19 = vld [vmem:[#allocation8 + $0xa0] sm:$0xff] }
  0xbc   :  { %1624 = vmatpush.bf16.msrb.mxu1 %v2414_v33  ;;  %1579 = vmatpush.bf16.msrb.mxu3 %v2682_v38  ;;  %v3120_v38 = vld [vmem:[#allocation5 + $0x56c] sm:$0xf]  ;;  %v2718_v1 = vor.u32 %v3116_v54, %v2715_v55 }
  0xbd   :  { %v2734_v50 = vor.u32 %v3120_v38, %v2731_v39  ;;  %v3147_v38 = vld [vmem:[#allocation8 + $0x20] sm:$0xff]  ;;  %v3156_v39 = vld [vmem:[#allocation8 + $0x68] sm:$0xff] }
  0xbe   :  { %1605 = vmatpush.bf16.msrb.mxu2 %v2046_v43  ;;  %1619 = vmatmul.bf16.vlgmr.msrb.gmra.mxu0 %v3378_v11  ;;  %v3412_v29 = vpop.f32.mrf.mxu0  ;;  %v3020_v11 = vld [vmem:[#allocation5 + $0x24c] sm:$0xf] }
  0xbf   :  { %1580 = vmatmul.bf16.vlgmr.msrb.gmra.mxu3 %v3390_v41  ;;  %1663 = vmatpush.bf16.msra.mxu0 %v2798_v58  ;;  %v2334_v44 = vor.u32 %v3020_v11, %v2331_v34  ;;  %v2443_v58 = vld [vmem:[#allocation5 + $0x338] sm:$0xf0]  ;;  %v3148_v34 = vld [vmem:[#allocation8 + $0x28] sm:$0xff] }
  0xc0   :  { %1637 = vmatpush.bf16.msra.mxu3 %v2542_v46  ;;  %1625 = vmatpush.bf16.msrb.mxu1 %v2398_v51  ;;  %v3414_v33 = vpop.f32.mrf.mxu1  ;;  %v3084_v46 = vld [vmem:[#allocation5 + $0x44c] sm:$0xf]  ;;  %v2446_v6 = vor.u32 %v3048_v56, %v2443_v58 }
  0xc1   :  { %1606 = vmatmul.bf16.vlgmr.msrb.gmra.mxu2 %v3374_v5  ;;  %v2766_v5 = vor.u32 %v3128_v13, %v2763_v14  ;;  %v2302_v14 = vor.u32 %v3012_v62, %v2299_v63  ;;  %v3152_v56 = vld [vmem:[#allocation8 + $0x48] sm:$0xff] }
  0xc2   :  { %1650 = vmatpush.bf16.msra.mxu2 %v2670_v47  ;;  %v2587_v47 = vld [vmem:[#allocation5 + $0x458] sm:$0xf0] }
  0xc3   :  { %1664 = vmatpush.bf16.msra.mxu0 %v2782_v9  ;;  %v2590_v53 = vor.u32 %v3084_v46, %v2587_v47  ;;  %v3112_v9 = vld [vmem:[#allocation5 + $0x52c] sm:$0xf] }
  0xc4   :  { %1638 = vmatpush.bf16.msra.mxu3 %v2526_v59  ;;  %1626 = vmatpush.bf16.msrb.mxu1 %v2382_v0  ;;  %v3416_v43 = vpop.f32.mrf.mxu2  ;;  %v3080_v59 = vld [vmem:[#allocation5 + $0x42c] sm:$0xf] }
  0xc5   :  { %v3418_v51 = vpop.f32.mrf.mxu3 }
  0xc6   :  { %1651 = vmatpush.bf16.msra.mxu2 %v2654_v60  ;;  %v2571_v60 = vld [vmem:[#allocation5 + $0x438] sm:$0xf0]  ;;  %v1336_v61 = vpop.f32.mrf.mxu0 }
  0xc7   :  { %1665 = vmatpush.bf16.msra.mxu0 %v2766_v5  ;;  %v2574_v7 = vor.u32 %v3080_v59, %v2571_v60 }
  0xc8   :  { %1639 = vmatpush.bf16.msra.mxu3 %v2510_v10  ;;  %1627 = vmatpush.bf16.msrb.mxu1 %v2366_v16  ;;  %v1349_v0 = vpop.f32.mrf.mxu1  ;;  %v2699_v10 = vld [vmem:[#allocation5 + $0x538] sm:$0xf0] }
  0xc9   :  { %v2427_v16 = vld [vmem:[#allocation5 + $0x318] sm:$0xf0]  ;;  %v2702_v21 = vor.u32 %v3112_v9, %v2699_v10  ;;  %v3165_v9 = vld [vmem:[#allocation8 + $0xb0] sm:$0xff] }
  0xca   :  { %1652 = vmatpush.bf16.msra.mxu2 %v2638_v12  ;;  %v3420_v12 = vld [vmem:[#allocation7] sm:$0xf]  ;;  %v2430_v5 = vor.u32 %v3044_v15, %v2427_v16  ;;  %v3164_v16 = vld [vmem:[#allocation8 + $0xa8] sm:$0xff] }
  0xcb   :  { %1666 = vmatpush.bf16.msra.mxu0 %v2750_v35  ;;  %v333_v22 = vperm.slane %v3420_v12, 0  ;;  %v334_v60 = vperm.slane %v3420_v12, 1 }
  0xcc   :  { %1640 = vmatpush.bf16.msra.mxu3 %v2494_v23  ;;  %1628 = vmatpush.bf16.msrb.mxu1 %v2350_v28  ;;  %v1362_v13 = vpop.f32.mrf.mxu2  ;;  %v3108_v23 = vld [vmem:[#allocation5 + $0x50c] sm:$0xf] }
  0xcd   :  { %v1375_v25 = vpop.f32.mrf.mxu3  ;;  %v1335_v30 = vadd.f32 %v3412_v29, %v333_v22 }
  0xce   :  { %1653 = vmatpush.bf16.msra.mxu2 %v2622_v24  ;;  %v2683_v24 = vld [vmem:[#allocation5 + $0x518] sm:$0xf0]  ;;  %v3161_v25 = vld [vmem:[#allocation8 + $0x90] sm:$0xff] }
  0xcf   :  { %1667 = vmatpush.bf16.msra.mxu0 %v2734_v50  ;;  %v2686_v28 = vor.u32 %v3108_v23, %v2683_v24  ;;  %v1348_v11 = vadd.f32 %v3414_v33, %v1335_v30  ;;  %v3146_v33 = vld [vmem:[#allocation8 + $0x18] sm:$0xff]  ;;  %v3153_v50 = vld [vmem:[#allocation8 + $0x50] sm:$0xff] }
  0xd0   :  { %1641 = vmatpush.bf16.msra.mxu3 %v2478_v36  ;;  %1629 = vmatpush.bf16.msrb.mxu1 %v2334_v44  ;;  %v3162_v23 = vld [vmem:[#allocation8 + $0x98] sm:$0xff] }
  0xd1   :  { %v1361_v36 = vadd.f32 %v3416_v43, %v1348_v11  ;;  %v3145_v43 = vld [vmem:[#allocation8 + $0x10] sm:$0xff]  ;;  %v3159_v11 = vld [vmem:[#allocation8 + $0x80] sm:$0xff] }
  0xd2   :  { %1654 = vmatpush.bf16.msra.mxu2 %v2606_v37 }
  0xd3   :  { %1668 = vmatpush.bf16.msra.mxu0 %v2718_v1 }
  0xd4   :  { %1642 = vmatpush.bf16.msra.mxu3 %v2462_v52  ;;  %1630 = vmatpush.bf16.msrb.mxu1 %v2318_v57  ;;  %v1412_v37 = vpop.f32.mrf.mxu2  ;;  %v3151_v57 = vld [vmem:[#allocation8 + $0x40] sm:$0xff] }
  0xd6   :  { %1655 = vmatpush.bf16.msra.mxu2 %v2590_v53  ;;  %v3143_v53 = vld [vmem:[#allocation8] sm:$0xff] }
  0xd7   :  { %1669 = vmatpush.bf16.msra.mxu0 %v2702_v21  ;;  %v1386_v29 = vpop.f32.mrf.mxu0 }
  0xd8   :  { %1643 = vmatpush.bf16.msra.mxu3 %v2446_v6  ;;  %1631 = vmatpush.bf16.msrb.mxu1 %v2302_v14  ;;  %v1399_v35 = vpop.f32.mrf.mxu1 }
  0xda   :  { %1656 = vmatpush.bf16.msra.mxu2 %v2574_v7  ;;  %v3166_v7 = vld [vmem:[#allocation8 + $0xb8] sm:$0xff] }
  0xdb   :  { %1632 = vmatmul.bf16.vlgmr.msrb.gmra.mxu1 %v3372_v3  ;;  %1670 = vmatpush.bf16.msra.mxu0 %v2686_v28  ;;  %v3157_v3 = vld [vmem:[#allocation8 + $0x70] sm:$0xff]  ;;  %v3160_v28 = vld [vmem:[#allocation8 + $0x88] sm:$0xff] }
  0xdc   :  { %1683 = vmatpush.bf16.msra.mxu1 %v2814_v20  ;;  %1644 = vmatpush.bf16.msra.mxu3 %v2430_v5  ;;  %v1414_v46 = vpop.f32.mrf.mxu2 }
  0xde   :  { %1657 = vmatpush.bf16.msra.mxu2 %v2558_v26  ;;  %1671 = vmatmul.bf16.vlgmr.msra.gmra.mxu0 %v3390_v41  ;;  %v3155_v41 = vld [vmem:[#allocation8 + $0x60] sm:$0xff] }
  0xdf   :  { %1645 = vmatmul.bf16.vlgmr.msra.gmra.mxu3 %v3376_v8  ;;  %v1374_v8 = vadd.f32 %v3418_v51, %v1361_v36  ;;  %v1388_v44 = vpop.f32.mrf.mxu0  ;;  %v335_v36 = vperm.slane %v3420_v12, 2 }
  0xe0   :  { %1957 = vmatpush.bf16.msrb.mxu3 %v3150_v27  ;;  %1970 = vmatpush.bf16.msrb.mxu1 %v3158_v31  ;;  %v1425_v42 = vpop.f32.mrf.mxu3  ;;  %v1401_v45 = vpop.f32.mrf.mxu1 }
  0xe1   :  { %1658 = vmatmul.bf16.vlgmr.msra.gmra.mxu2 %v3388_v40  ;;  %v1387_v40 = vadd.f32 %v1386_v29, %v1374_v8  ;;  %v1426_v62 = vadd.f32 %v1425_v42, %v334_v60  ;;  %v3174_v29 = vld [vmem:[#allocation8 + $0xf8] sm:$0xff]  ;;  %v3172_v8 = vld [vmem:[#allocation8 + $0xe8] sm:$0xff]  ;;  %v3171_v42 = vld [vmem:[#allocation8 + $0xe0] sm:$0xff]  ;;  %v336_v60 = vperm.slane %v3420_v12, 3 }
  0xe2   :  { %1983 = vmatpush.bf16.msrb.mxu2 %v3166_v7  ;;  %1996 = vmatpush.bf16.msrb.mxu0 %v3174_v29 }
  0xe3   :  { %v1400_v47 = vadd.f32 %v1399_v35, %v1387_v40 }
  0xe4   :  { %1958 = vmatpush.bf16.msrb.mxu3 %v3149_v32  ;;  %1971 = vmatpush.bf16.msrb.mxu1 %v3157_v3  ;;  %v1438_v54 = vpop.f32.mrf.mxu2  ;;  %v3173_v3 = vld [vmem:[#allocation8 + $0xf0] sm:$0xff] }
  0xe5   :  { %v1413_v51 = vadd.f32 %v1412_v37, %v1400_v47  ;;  %v1439_v1 = vadd.f32 %v1438_v54, %v1426_v62  ;;  %v3168_v54 = vld [vmem:[#allocation8 + $0xc8] sm:$0xff] }
  0xe6   :  { %1984 = vmatpush.bf16.msrb.mxu2 %v3165_v9  ;;  %1997 = vmatpush.bf16.msrb.mxu0 %v3173_v3 }
  0xe7   :  { %v1689_v55 = vmax.f32 %v1413_v51, 0.0 }
  0xe8   :  { %1959 = vmatpush.bf16.msrb.mxu3 %v3148_v34  ;;  %1972 = vmatpush.bf16.msrb.mxu1 %v3156_v39  ;;  %v1427_v52 = vpop.f32.mrf.mxu3 }
  0xea   :  { %1985 = vmatpush.bf16.msrb.mxu2 %v3164_v16  ;;  %1998 = vmatpush.bf16.msrb.mxu0 %v3172_v8 }
  0xeb   :  { %2818 = vmatmul.msk.bf16.vlgmr.msra.gmra.mxu1 %vm1321_vm0, %v3384_v18  ;;  %v1693_v18 = vpack.c.bf16 %v1689_v55, %v1689_v55 }
  0xec   :  { %1960 = vmatpush.bf16.msrb.mxu3 %v3147_v38  ;;  %1973 = vmatpush.bf16.msrb.mxu1 %v3155_v41  ;;  %v1440_v58 = vpop.f32.mrf.mxu2  ;;  %v3170_v41 = vld [vmem:[#allocation8 + $0xd8] sm:$0xff] }
  0xed   :  { %v3167_v58 = vld [vmem:[#allocation8 + $0xc0] sm:$0xff] }
  0xee   :  { %1986 = vmatpush.bf16.msrb.mxu2 %v3163_v19  ;;  %1999 = vmatpush.bf16.msrb.mxu0 %v3171_v42 }
  0xf0   :  { %1961 = vmatpush.bf16.msrb.mxu3 %v3146_v33  ;;  %1974 = vmatpush.bf16.msrb.mxu1 %v3154_v48 }
  0xf2   :  { %1987 = vmatpush.bf16.msrb.mxu2 %v3162_v23  ;;  %2000 = vmatpush.bf16.msrb.mxu0 %v3170_v41 }
  0xf4   :  { %1962 = vmatpush.bf16.msrb.mxu3 %v3145_v43  ;;  %1975 = vmatpush.bf16.msrb.mxu1 %v3153_v50  ;;  %v3169_v50 = vld [vmem:[#allocation8 + $0xd0] sm:$0xff] }
  0xf6   :  { %1988 = vmatpush.bf16.msrb.mxu2 %v3161_v25  ;;  %2001 = vmatpush.bf16.msrb.mxu0 %v3169_v50 }
  0xf7   :  { %v1451_v59 = vpop.f32.mrf.mxu0 }
  0xf8   :  { %1963 = vmatpush.bf16.msrb.mxu3 %v3144_v49  ;;  %1976 = vmatpush.bf16.msrb.mxu1 %v3152_v56  ;;  %v1452_v6 = vadd.f32 %v1451_v59, %v1439_v1 }
  0xfa   :  { %v1464_v61 = vpop.f32.mrf.mxu1  ;;  %1989 = vmatpush.bf16.msrb.mxu2 %v3160_v28  ;;  %2002 = vmatpush.bf16.msrb.mxu0 %v3168_v54 }
  0xfb   :  { %v1465_v13 = vadd.f32 %v1464_v61, %v1452_v6 }
  0xfc   :  { %1964 = vmatpush.bf16.msrb.mxu3 %v3143_v53  ;;  %1977 = vmatpush.bf16.msrb.mxu1 %v3151_v57 }
  0xfe   :  { %v1477_v63 = vpop.f32.mrf.mxu3  ;;  %1990 = vmatpush.bf16.msrb.mxu2 %v3159_v11  ;;  %2003 = vmatpush.bf16.msrb.mxu0 %v3167_v58 }
  0xff   :  { %1965 = vmatmul.bf16.vlgmr.msrb.gmra.mxu3 %v1693_v18  ;;  %v1453_v0 = vpop.f32.mrf.mxu0  ;;  %v1478_v14 = vadd.f32 %v1477_v63, %v1465_v13 }
 0x102   :  { %v1466_v4 = vpop.f32.mrf.mxu1 }
 0x104   :  { %v1490_v2 = vpop.f32.mrf.mxu2 }
 0x105   :  { %v1491_v17 = vadd.f32 %v1490_v2, %v1478_v14 }
 0x106   :  { %v1479_v10 = vpop.f32.mrf.mxu3 }
 0x10c   :  { %v1492_v15 = vpop.f32.mrf.mxu2 }
 0x10e   :  { %v1503_v20 = vpop.f32.mrf.mxu3 }
 0x10f   :  { %v1504_v21 = vadd.f32 %v1503_v20, %v1491_v17 }
 0x111   :  { %v1690_v22 = vmax.f32 %v1504_v21, 0.0 }
 0x113   :  { %v1694_v5 = vpack.c.bf16 %v1690_v22, %v1690_v22 }
 0x115   :  { %1978 = vmatmul.bf16.vlgmr.msrb.gmra.mxu1 %v1694_v5  ;;  %v3188_v5 = vld [vmem:[%s3446_s4] ss:$0 sm:$0xff] }
 0x116   :  { %v1505_v24 = vpop.f32.mrf.mxu3 }
 0x117   :  { %v1542_v26 = vpop.f32.mrf.mxu0 }
 0x118   :  { %v1516_v27 = vpop.f32.mrf.mxu1 }
 0x119   :  { %v1517_v39 = vadd.f32 %v1516_v27, %v335_v36 }
 0x11f   :  { %v1544_v31 = vpop.f32.mrf.mxu0 }
 0x120   :  { %v1518_v32 = vpop.f32.mrf.mxu1 }
 0x122   :  { %v1529_v30 = vpop.f32.mrf.mxu3 }
 0x123   :  { %v1530_v33 = vadd.f32 %v1529_v30, %v1517_v39 }
 0x124   :  { %v1555_v34 = vpop.f32.mrf.mxu2 }
 0x125   :  { %v1543_v45 = vadd.f32 %v1542_v26, %v1530_v33 }
 0x127   :  { %v1594_v37 = vpop.f32.mrf.mxu0  ;;  %v1556_v46 = vadd.f32 %v1555_v34, %v1543_v45 }
 0x12a   :  { %v1531_v35 = vpop.f32.mrf.mxu3 }
 0x12c   :  { %v1557_v38 = vpop.f32.mrf.mxu2 }
 0x12f   :  { %v1596_v40 = vpop.f32.mrf.mxu0 }
 0x138   :  { %v1568_v44 = vpop.f32.mrf.mxu1 }
 0x139   :  { %v1569_v47 = vadd.f32 %v1568_v44, %v1556_v46 }
 0x13b   :  { %v1620_v43 = vpop.f32.mrf.mxu0 }
 0x140   :  { %v1570_v49 = vpop.f32.mrf.mxu1 }
 0x142   :  { %v1581_v48 = vpop.f32.mrf.mxu3 }
 0x143   :  { %v1582_v51 = vadd.f32 %v1581_v48, %v1569_v47  ;;  %v1622_v56 = vpop.f32.mrf.mxu0 }
 0x144   :  { %v1607_v52 = vpop.f32.mrf.mxu2 }
 0x145   :  { %v1595_v53 = vadd.f32 %v1594_v37, %v1582_v51  ;;  %v1608_v61 = vadd.f32 %v1607_v52, %v336_v60 }
 0x147   :  { %v1691_v55 = vmax.f32 %v1595_v53, 0.0  ;;  %v1621_v63 = vadd.f32 %v1620_v43, %v1608_v61 }
 0x149   :  { %v1695_v18 = vpack.c.bf16 %v1691_v55, %v1691_v55 }
 0x14a   :  { %v1583_v57 = vpop.f32.mrf.mxu3 }
 0x14b   :  { %1991 = vmatmul.bf16.vlgmr.msrb.gmra.mxu2 %v1695_v18 }
 0x14c   :  { %v1609_v59 = vpop.f32.mrf.mxu2 }
 0x158   :  { %v1633_v62 = vpop.f32.mrf.mxu1 }
 0x159   :  { %v1634_v1 = vadd.f32 %v1633_v62, %v1621_v63 }
 0x15b   :  { %v1672_v0 = vpop.f32.mrf.mxu0 }
 0x160   :  { %v1635_v2 = vpop.f32.mrf.mxu1 }
 0x162   :  { %v1646_v4 = vpop.f32.mrf.mxu3 }
 0x163   :  { %v1647_v6 = vadd.f32 %v1646_v4, %v1634_v1  ;;  %v1674_v10 = vpop.f32.mrf.mxu0 }
 0x164   :  { %v1659_v7 = vpop.f32.mrf.mxu2 }
 0x165   :  { %v1660_v9 = vadd.f32 %v1659_v7, %v1647_v6 }
 0x167   :  { %v1673_v13 = vadd.f32 %v1672_v0, %v1660_v9 }
 0x168   :  { %v1685_v14 = vpop.f32.mrf.mxu1 }
 0x169   :  { %v1686_v15 = vadd.f32 %v1685_v14, %v1673_v13 }
 0x16a   :  { %v1648_v16 = vpop.f32.mrf.mxu3 }
 0x16b   :  { %v1692_v19 = vmax.f32 %v1686_v15, 0.0 }
 0x16c   :  { %v1661_v17 = vpop.f32.mrf.mxu2 }
 0x16d   :  { %v1696_v20 = vpack.c.bf16 %v1692_v19, %v1692_v19 }
 0x16f   :  { %2004 = vmatmul.bf16.vlgmr.msrb.gmra.mxu0 %v1696_v20 }
 0x170   :  { %v1687_v12 = vpop.f32.mrf.mxu1 }
 0x182   :  { %v1966_v21 = vpop.f32.mrf.mxu3 }
 0x183   :  { %v1967_v23 = vadd.f32 %v3188_v5, %v1966_v21 }
 0x18a   :  { %v1968_v22 = vpop.f32.mrf.mxu3 }
 0x192   :  { %v1979_v24 = vpop.f32.mrf.mxu1 }
 0x193   :  { %v1980_v25 = vadd.f32 %v1979_v24, %v1967_v23 }
 0x19a   :  { %v1981_v26 = vpop.f32.mrf.mxu1 }
 0x1ce   :  { %v1992_v27 = vpop.f32.mrf.mxu2 }
 0x1cf   :  { %v1993_v30 = vadd.f32 %v1992_v27, %v1980_v25 }
 0x1d6   :  { %v1994_v28 = vpop.f32.mrf.mxu2 }
 0x1ec   :  { %v2005_v31 = vpop.f32.mrf.mxu0 }
 0x1ed   :  { %v2006_v32 = vadd.f32 %v2005_v31, %v1993_v30 }
 0x1ef   :  { %2009 = vst [vmem:[#allocation10] sm:$0xff] %v2006_v32 }
 0x1f4   :  { %v2007_v11 = vpop.f32.mrf.mxu0 }
 0x1f5   :  { %2013 = vsyncadd [#allocation4], 96  ;;  %s2016_s19 = sshll.u32 %s3447_s5, 4  ;;  %s3327_s20 = smov [#allocation10]   ;;  %s2017_s19 = int_to_ptr.hbm [resolvable:$true] %s2016_s19 }
 0x1f6   :  { %s2014_s21 = sshll.u32 %s3327_s20, 4  ;;  %s3328_s4 = smov 32   ;;  %s2015_s21 = int_to_ptr.vmem [resolvable:$true] %s2014_s21 }
 0x1f7   :  { %s3329_s22 = smov 2  }
 0x1f8   :  { %2022 = dma.vmem_to_hbm [thread:$0]  %s2015_s21, 32, %s2017_s19, [#allocation4], %s3328_s4, %s3328_s4, %s3329_s22  }
 0x1f9   :  { %3315 = dma.done.wait [#allocation4], 128  }
 0x1fa   :  { %3316 = vsyncadd [#allocation4], 4294967168 }
 0x1fb   :  { %2027 = vsyncpa [#allocation3], 1 }
 0x1fc   :  { %2028 = vsyncpa [#allocation6], 1 }
 0x1fd   :  { %2029 = vsyncpa [#allocation9], 1 }
 0x1fe   :  { %2030 = vsyncpa [#allocation4], 1 }

</bundles_post_ra>
